<compile_context>
chip_gen: v6e
topology: v6e:2x2x1
jax: 0.10.0
libtpu: 0.0.40
codegen_flags: <defaults>
</compile_context>

<pallas_src>
import jax
import jax.numpy as jnp
from jax.experimental import pallas as pl
from jax.experimental.pallas import tpu as pltpu


def _round_up(x, m):
    return ((x + m - 1) // m) * m


def _tpu_budget():
    """Returns (vmem_capacity_bytes_per_core, is_megacore) with safe fallbacks."""
    vmem_cap = None
    try:
        info = pltpu.get_tpu_info()
        vmem_cap = int(info.vmem_capacity_bytes)
    except Exception:
        vmem_cap = None
    try:
        kind = jax.devices()[0].device_kind.lower()
    except Exception:
        kind = ""
    is_v7 = ("v7" in kind) or ("7x" in kind)
    if vmem_cap is None:
        vmem_cap = (64 << 20) if is_v7 else (128 << 20)
    megacore = is_v7 or vmem_cap <= (64 << 20)
    return vmem_cap, megacore


def _pick_block_sizes(B, C, HW, itemsize, target_bytes, megacore):
    """Choose (Bt, tHW, needs_mask) for the x block (Bt, C, tHW).

    Bt divides B and is a multiple of 8 (or == B) so the (Bt, C) output block is
    layout-legal. tHW is a multiple of 128 (or == HW); if it does not divide HW
    the grid uses cdiv and the tail tile is masked in-kernel. The block byte
    budget is honored by size, not by divisibility.
    """
    per_image_full = C * HW * itemsize
    bt_cands = [b for b in range(B, 0, -1)
                if B % b == 0 and (b % 8 == 0 or b == B)]

    fitting = [b for b in bt_cands if b * per_image_full <= target_bytes]
    if fitting:
        if megacore:
            # v7x: shard the "parallel" batch axis over both TensorCores ->
            # prefer the largest tile giving an EVEN number of batch steps.
            even = [b for b in fitting if (B // b) % 2 == 0]
            if even:
                return even[0], HW, False
        # Single TC (v5e/v6e) or no even split possible: largest fitting tile,
        # i.e. fewest grid steps / longest DMAs.
        return fitting[0], HW, False

    # Even one batch tile at full HW exceeds the target -> tile the spatial axis.
    bt = bt_cands[-1]
    # Each row of the block is a contiguous chunk of tHW*itemsize bytes; prefer
    # >= ~2 KiB chunks for DMA efficiency (512 lanes for f32, 1024 for bf16).
    min_thw = _round_up(max(128, -(-2048 // itemsize)), 128)
    max_thw = (target_bytes // (bt * C * itemsize)) // 128 * 128
    thw = max(max_thw, 128)
    if thw < min_thw and bt * C * min_thw * itemsize <= 2 * target_bytes:
        thw = min_thw
    if thw >= HW:
        return bt, HW, False
    return bt, thw, (HW % thw != 0)


def _make_kernel(Bt, C, total_hw, tHW, needs_mask):
    inv_hw = 1.0 / float(total_hw)

    def kernel(x_ref, w1t_ref, b1_ref, w2t_ref, b2_ref, o_ref, acc):
        k = pl.program_id(1)

        @pl.when(k == 0)
        def _():
            acc[0] = jnp.zeros((Bt, C), jnp.float32)
            acc[1] = jnp.full((Bt, C), -jnp.inf, jnp.float32)

        xn = x_ref[...]                                  # (Bt, C, tHW), native dtype
        if needs_mask:
            # Tail tile of the cdiv grid: out-of-bounds lanes contribute 0 to the
            # sum and -inf to the max.
            lane = jax.lax.broadcasted_iota(jnp.int32, (1, 1, tHW), 2)
            valid = (k * tHW + lane) < total_hw
            xs = jnp.where(valid, xn, jnp.zeros((), xn.dtype)).astype(jnp.float32)
            xm = jnp.where(valid, xn, jnp.asarray(-jnp.inf, xn.dtype))
        else:
            xs = xn.astype(jnp.float32)
            xm = xn
        acc[0] += jnp.sum(xs, axis=-1)                                   # f32 sum
        acc[1] = jnp.maximum(acc[1], jnp.max(xm, axis=-1).astype(jnp.float32))

        @pl.when(k == pl.num_programs(1) - 1)
        def _():
            # Rows 0:Bt = avg (scale the running sum in place), rows Bt:2Bt = max.
            acc[0] = acc[0] * inv_hw
            pooled = acc[...].reshape(2 * Bt, C)         # no concatenate needed
            h = jnp.dot(pooled, w1t_ref[...],
                        preferred_element_type=jnp.float32) + b1_ref[...]
            h = jnp.maximum(h, 0.0)                      # ReLU
            out = jnp.dot(h, w2t_ref[...],
                          preferred_element_type=jnp.float32) + b2_ref[...]
            att = jax.nn.sigmoid(out[:Bt] + out[Bt:])    # (Bt, C)
            o_ref[...] = att.astype(o_ref.dtype)

    return kernel


def channel_attention(x, w1, b1, w2, b2, *, target_block_bytes=None):
    """x:  (B, C, H, W) NCHW (any float dtype; DMA'd as-is).
    w1: (C//16, C), b1: (C//16,)  -- first 1x1 conv (squeeze)
    w2: (C, C//16), b2: (C,)      -- second 1x1 conv (excite)
    Returns the (B, C, 1, 1) attention map (dtype follows PyTorch promotion)."""
    B, C, H, W = x.shape
    hidden = w1.shape[0]
    HW = H * W

    xf = x.reshape(B, C, HW)                            # native dtype, no upcast
    w1t = jnp.asarray(w1, jnp.float32).T                # (C, hidden)
    w2t = jnp.asarray(w2, jnp.float32).T                # (hidden, C)
    b1r = jnp.asarray(b1, jnp.float32).reshape(1, hidden)
    b2r = jnp.asarray(b2, jnp.float32).reshape(1, C)
    out_dtype = jnp.promote_types(x.dtype, jnp.float32)

    itemsize = jnp.dtype(x.dtype).itemsize
    vmem_cap, megacore = _tpu_budget()
    if target_block_bytes is None:
        # ~30% of per-core VMEM (x is double-buffered), capped at 32 MiB.
        target_block_bytes = min(32 << 20, (vmem_cap * 3) // 10)
    target_block_bytes = min(int(target_block_bytes), (vmem_cap * 2) // 5)

    Bt, tHW, needs_mask = _pick_block_sizes(B, C, HW, itemsize,
                                            target_block_bytes, megacore)
    n_b = B // Bt
    n_hw = pl.cdiv(HW, tHW)

    x_block_bytes = Bt * C * tHW * itemsize
    # Double-buffered x + weights/biases/scratch/output headroom, clamped to the
    # chip's real VMEM (64 MiB per core on v7x, 128 MiB on v5e/v6e).
    vmem_bytes = int(min(max(2 * x_block_bytes + (6 << 20), 16 << 20),
                         (vmem_cap * 4) // 5))

    out = pl.pallas_call(
        _make_kernel(Bt, C, HW, tHW, needs_mask),
        out_shape=jax.ShapeDtypeStruct((B, C), out_dtype),
        grid=(n_b, n_hw),
        in_specs=[
            pl.BlockSpec((Bt, C, tHW), lambda b, k: (b, 0, k)),   # x tile
            pl.BlockSpec((C, hidden), lambda b, k: (0, 0)),       # w1^T (shared)
            pl.BlockSpec((1, hidden), lambda b, k: (0, 0)),       # b1
            pl.BlockSpec((hidden, C), lambda b, k: (0, 0)),       # w2^T (shared)
            pl.BlockSpec((1, C), lambda b, k: (0, 0)),            # b2
        ],
        out_specs=pl.BlockSpec((Bt, C), lambda b, k: (b, 0)),     # resident across k
        scratch_shapes=[
            pltpu.VMEM((2, Bt, C), jnp.float32),   # [0]=running sum, [1]=running max
        ],
        compiler_params=pltpu.CompilerParams(
            dimension_semantics=("parallel", "arbitrary"),
            vmem_limit_bytes=vmem_bytes),
    )(xf, w1t, b1r, w2t, b2r)

    return out.reshape(B, C, 1, 1)


def reference(x, w1, b1, w2, b2):
    """Plain-JAX reference mirroring the PyTorch forward (f32 math)."""
    xf = x.astype(jnp.float32)
    avg = jnp.mean(xf, axis=(2, 3))                 # (B, C)
    mx = jnp.max(xf, axis=(2, 3))                   # (B, C)

    def fc(v):
        h = jnp.maximum(v @ w1.T + b1, 0.0)
        return h @ w2.T + b2

    out = jax.nn.sigmoid(fc(avg) + fc(mx))          # (B, C)
    return out[:, :, None, None]


if __name__ == "__main__":
    # in_planes must be a multiple of 16 (module hardcodes C // 16 hidden units).
    B, C, H, W = 8, 64, 16, 16
    hidden = C // 16

    key = jax.random.PRNGKey(0)
    kx, kw1, kb1, kw2, kb2 = jax.random.split(key, 5)

    x = jax.random.normal(kx, (B, C, H, W), dtype=jnp.float32)
    # Conv2d 1x1 weight (out, in, 1, 1) squeezed to (out, in).
    w1 = jax.random.normal(kw1, (hidden, C), dtype=jnp.float32) * 0.1
    b1 = jax.random.normal(kb1, (hidden,), dtype=jnp.float32) * 0.1
    w2 = jax.random.normal(kw2, (C, hidden), dtype=jnp.float32) * 0.1
    b2 = jax.random.normal(kb2, (C,), dtype=jnp.float32) * 0.1

    out = jax.block_until_ready(channel_attention(x, w1, b1, w2, b2))
    ref = reference(x, w1, b1, w2, b2)
    assert out.shape == (B, C, 1, 1), out.shape
    err = float(jnp.max(jnp.abs(out.astype(jnp.float32) - ref)))
    assert err < 1e-3, err

    # Also exercise the spatial-tiled (cdiv + tail-mask) path: HW with no
    # 128-multiple divisor and a tiny byte target.
    H2 = W2 = 23
    x2 = jax.random.normal(kx, (B, C, H2, W2), dtype=jnp.float32)
    out2 = jax.block_until_ready(
        channel_attention(x2, w1, b1, w2, b2, target_block_bytes=64 << 10))
    ref2 = reference(x2, w1, b1, w2, b2)
    err2 = float(jnp.max(jnp.abs(out2.astype(jnp.float32) - ref2)))
    assert err2 < 1e-3, err2

    print("KERNEL_OK")
</pallas_src>

<mosaic_0001>
module attributes {stable_mosaic.version = 11 : i64} {
  func.func @kernel(%arg0: i32, %arg1: i32, %arg2: memref<8x64x256xf32, #tpu.memory_space<vmem>>, %arg3: memref<64x4xf32, #tpu.memory_space<vmem>>, %arg4: memref<1x4xf32, #tpu.memory_space<vmem>>, %arg5: memref<4x64xf32, #tpu.memory_space<vmem>>, %arg6: memref<1x64xf32, #tpu.memory_space<vmem>>, %arg7: memref<8x64xf32, #tpu.memory_space<vmem>>, %arg8: memref<2x8x64xf32, #tpu.memory_space<vmem>>) attributes {dimension_semantics = [#tpu.dimension_semantics<parallel>, #tpu.dimension_semantics<arbitrary>], iteration_bounds = array<i64: 1, 1>, scalar_prefetch = 0 : i64, scratch_operands = 1 : i64, tpu.core_type = #tpu.core_type<tc>, window_params = [{transform_indices = @transform_0, window_bounds = array<i64: 8, 64, 256>}, {pipeline_mode = #tpu.pipeline_mode<synchronous>, transform_indices = @transform_1, window_bounds = array<i64: 64, 4>}, {pipeline_mode = #tpu.pipeline_mode<synchronous>, transform_indices = @transform_2, window_bounds = array<i64: 1, 4>}, {pipeline_mode = #tpu.pipeline_mode<synchronous>, transform_indices = @transform_3, window_bounds = array<i64: 4, 64>}, {pipeline_mode = #tpu.pipeline_mode<synchronous>, transform_indices = @transform_4, window_bounds = array<i64: 1, 64>}, {transform_indices = @transform_5, window_bounds = array<i64: 8, 64>}]} {
    %c0_i32 = arith.constant 0 : i32
    %0 = arith.cmpi eq, %arg1, %c0_i32 : i32
    %1 = arith.extui %0 : i1 to i32
    %c0_i32_0 = arith.constant 0 : i32
    %2 = arith.cmpi ne, %1, %c0_i32_0 : i32
    scf.if %2 {
      %cst_17 = arith.constant 0.000000e+00 : f32
      %21 = vector.broadcast %cst_17 : f32 to vector<8x64xf32>
      %c0_18 = arith.constant 0 : index
      %c0_19 = arith.constant 0 : index
      %c0_20 = arith.constant 0 : index
      %22 = vector.load %arg8[%c0_18, %c0_19, %c0_20] : memref<2x8x64xf32, #tpu.memory_space<vmem>>, vector<1x8x64xf32>
      %23 = vector.shape_cast %22 : vector<1x8x64xf32> to vector<8x64xf32>
      %24 = vector.shape_cast %21 : vector<8x64xf32> to vector<1x8x64xf32>
      tpu.vector_store %arg8[%c0_18, %c0_19, %c0_20], %24 {strides = array<i32>} : memref<2x8x64xf32, #tpu.memory_space<vmem>>, vector<1x8x64xf32>,
      %cst_21 = arith.constant 0xFF800000 : f32
      %25 = vector.broadcast %cst_21 : f32 to vector<8x64xf32>
      %c1_22 = arith.constant 1 : index
      %c0_23 = arith.constant 0 : index
      %c0_24 = arith.constant 0 : index
      %26 = vector.load %arg8[%c1_22, %c0_23, %c0_24] : memref<2x8x64xf32, #tpu.memory_space<vmem>>, vector<1x8x64xf32>
      %27 = vector.shape_cast %26 : vector<1x8x64xf32> to vector<8x64xf32>
      %28 = vector.shape_cast %25 : vector<8x64xf32> to vector<1x8x64xf32>
      tpu.vector_store %arg8[%c1_22, %c0_23, %c0_24], %28 {strides = array<i32>} : memref<2x8x64xf32, #tpu.memory_space<vmem>>, vector<1x8x64xf32>,
    } else {
    }
    %c0 = arith.constant 0 : index
    %c0_1 = arith.constant 0 : index
    %c0_2 = arith.constant 0 : index
    %3 = vector.load %arg2[%c0, %c0_1, %c0_2] : memref<8x64x256xf32, #tpu.memory_space<vmem>>, vector<8x64x256xf32>
    %c0_3 = arith.constant 0 : index
    %c0_4 = arith.constant 0 : index
    %c0_5 = arith.constant 0 : index
    %4 = vector.load %arg8[%c0_3, %c0_4, %c0_5] : memref<2x8x64xf32, #tpu.memory_space<vmem>>, vector<1x8x64xf32>
    %5 = vector.shape_cast %4 : vector<1x8x64xf32> to vector<8x64xf32>
    %cst = arith.constant dense<0.000000e+00> : vector<8x64xf32>
    %6 = vector.multi_reduction <add>, %3, %cst [2] : vector<8x64x256xf32> to vector<8x64xf32>
    %7 = arith.addf %5, %6 : vector<8x64xf32>
    %c0_6 = arith.constant 0 : index
    %c0_7 = arith.constant 0 : index
    %c0_8 = arith.constant 0 : index
    %8 = vector.load %arg8[%c0_6, %c0_7, %c0_8] : memref<2x8x64xf32, #tpu.memory_space<vmem>>, vector<1x8x64xf32>
    %9 = vector.shape_cast %8 : vector<1x8x64xf32> to vector<8x64xf32>
    %10 = vector.shape_cast %7 : vector<8x64xf32> to vector<1x8x64xf32>
    tpu.vector_store %arg8[%c0_6, %c0_7, %c0_8], %10 {strides = array<i32>} : memref<2x8x64xf32, #tpu.memory_space<vmem>>, vector<1x8x64xf32>,
    %c1 = arith.constant 1 : index
    %c0_9 = arith.constant 0 : index
    %c0_10 = arith.constant 0 : index
    %11 = vector.load %arg8[%c1, %c0_9, %c0_10] : memref<2x8x64xf32, #tpu.memory_space<vmem>>, vector<1x8x64xf32>
    %12 = vector.shape_cast %11 : vector<1x8x64xf32> to vector<8x64xf32>
    %cst_11 = arith.constant dense<0xFF800000> : vector<8x64xf32>
    %13 = vector.multi_reduction <maximumf>, %3, %cst_11 [2] : vector<8x64x256xf32> to vector<8x64xf32>
    %14 = arith.maximumf %12, %13 : vector<8x64xf32>
    %c1_12 = arith.constant 1 : index
    %c0_13 = arith.constant 0 : index
    %c0_14 = arith.constant 0 : index
    %15 = vector.load %arg8[%c1_12, %c0_13, %c0_14] : memref<2x8x64xf32, #tpu.memory_space<vmem>>, vector<1x8x64xf32>
    %16 = vector.shape_cast %15 : vector<1x8x64xf32> to vector<8x64xf32>
    %17 = vector.shape_cast %14 : vector<8x64xf32> to vector<1x8x64xf32>
    tpu.vector_store %arg8[%c1_12, %c0_13, %c0_14], %17 {strides = array<i32>} : memref<2x8x64xf32, #tpu.memory_space<vmem>>, vector<1x8x64xf32>,
    %c0_i32_15 = arith.constant 0 : i32
    %18 = arith.cmpi eq, %arg1, %c0_i32_15 : i32
    %19 = arith.extui %18 : i1 to i32
    %c0_i32_16 = arith.constant 0 : i32
    %20 = arith.cmpi ne, %19, %c0_i32_16 : i32
    scf.if %20 {
      %c0_17 = arith.constant 0 : index
      %c0_18 = arith.constant 0 : index
      %c0_19 = arith.constant 0 : index
      %21 = vector.load %arg8[%c0_17, %c0_18, %c0_19] : memref<2x8x64xf32, #tpu.memory_space<vmem>>, vector<1x8x64xf32>
      %22 = vector.shape_cast %21 : vector<1x8x64xf32> to vector<8x64xf32>
      %cst_20 = arith.constant 3.906250e-03 : f32
      %23 = vector.broadcast %cst_20 : f32 to vector<8x64xf32>
      %24 = arith.mulf %22, %23 : vector<8x64xf32>
      %c0_21 = arith.constant 0 : index
      %c0_22 = arith.constant 0 : index
      %c0_23 = arith.constant 0 : index
      %25 = vector.load %arg8[%c0_21, %c0_22, %c0_23] : memref<2x8x64xf32, #tpu.memory_space<vmem>>, vector<1x8x64xf32>
      %26 = vector.shape_cast %25 : vector<1x8x64xf32> to vector<8x64xf32>
      %27 = vector.shape_cast %24 : vector<8x64xf32> to vector<1x8x64xf32>
      tpu.vector_store %arg8[%c0_21, %c0_22, %c0_23], %27 {strides = array<i32>} : memref<2x8x64xf32, #tpu.memory_space<vmem>>, vector<1x8x64xf32>,
      %c0_24 = arith.constant 0 : index
      %c0_25 = arith.constant 0 : index
      %c0_26 = arith.constant 0 : index
      %28 = vector.load %arg8[%c0_24, %c0_25, %c0_26] : memref<2x8x64xf32, #tpu.memory_space<vmem>>, vector<2x8x64xf32>
      %29 = vector.shape_cast %28 : vector<2x8x64xf32> to vector<16x64xf32>
      %c0_27 = arith.constant 0 : index
      %c0_28 = arith.constant 0 : index
      %30 = vector.load %arg3[%c0_27, %c0_28] : memref<64x4xf32, #tpu.memory_space<vmem>>, vector<64x4xf32>
      %cst_29 = arith.constant dense<0.000000e+00> : vector<16x4xf32>
      %31 = tpu.matmul %29, %30, %cst_29 {dimension_numbers = #tpu.dot_dimension_numbers<[1], [0], [0], [1], [0, 0, 1, 1], [], []>} : vector<16x64xf32>, vector<64x4xf32>, vector<16x4xf32> -> vector<16x4xf32>
      %c0_30 = arith.constant 0 : index
      %c0_31 = arith.constant 0 : index
      %32 = vector.load %arg4[%c0_30, %c0_31] : memref<1x4xf32, #tpu.memory_space<vmem>>, vector<1x4xf32>
      %33 = vector.broadcast %32 : vector<1x4xf32> to vector<16x4xf32>
      %34 = arith.addf %31, %33 : vector<16x4xf32>
      %cst_32 = arith.constant 0.000000e+00 : f32
      %35 = vector.broadcast %cst_32 : f32 to vector<16x4xf32>
      %36 = arith.maximumf %34, %35 : vector<16x4xf32>
      %c0_33 = arith.constant 0 : index
      %c0_34 = arith.constant 0 : index
      %37 = vector.load %arg5[%c0_33, %c0_34] : memref<4x64xf32, #tpu.memory_space<vmem>>, vector<4x64xf32>
      %cst_35 = arith.constant dense<0.000000e+00> : vector<16x64xf32>
      %38 = tpu.matmul %36, %37, %cst_35 {dimension_numbers = #tpu.dot_dimension_numbers<[1], [0], [0], [1], [0, 0, 1, 1], [], []>} : vector<16x4xf32>, vector<4x64xf32>, vector<16x64xf32> -> vector<16x64xf32>
      %c0_36 = arith.constant 0 : index
      %c0_37 = arith.constant 0 : index
      %39 = vector.load %arg6[%c0_36, %c0_37] : memref<1x64xf32, #tpu.memory_space<vmem>>, vector<1x64xf32>
      %40 = vector.broadcast %39 : vector<1x64xf32> to vector<16x64xf32>
      %41 = arith.addf %38, %40 : vector<16x64xf32>
      %42 = vector.extract_strided_slice %41 {offsets = [0, 0], sizes = [8, 64], strides = [1, 1]} : vector<16x64xf32> to vector<8x64xf32>
      %43 = vector.extract_strided_slice %41 {offsets = [8, 0], sizes = [8, 64], strides = [1, 1]} : vector<16x64xf32> to vector<8x64xf32>
      %44 = arith.addf %42, %43 : vector<8x64xf32>
      %45 = arith.negf %44 : vector<8x64xf32>
      %46 = math.exp %45 : vector<8x64xf32>
      %cst_38 = arith.constant 1.000000e+00 : f32
      %47 = vector.broadcast %cst_38 : f32 to vector<8x64xf32>
      %48 = arith.addf %47, %46 : vector<8x64xf32>
      %49 = arith.divf %47, %48 : vector<8x64xf32>
      %c0_39 = arith.constant 0 : index
      %c0_40 = arith.constant 0 : index
      %50 = vector.load %arg7[%c0_39, %c0_40] : memref<8x64xf32, #tpu.memory_space<vmem>>, vector<8x64xf32>
      tpu.vector_store %arg7[%c0_39, %c0_40], %49 {strides = array<i32>} : memref<8x64xf32, #tpu.memory_space<vmem>>, vector<8x64xf32>,
    } else {
    }
    return
  }
  func.func @transform_0(%arg0: i32, %arg1: i32) -> (i32, i32, i32) {
    %c0_i32 = arith.constant 0 : i32
    %c0_i32_0 = arith.constant 0 : i32
    return %arg0, %c0_i32, %arg1 : i32, i32, i32
  }
  func.func @transform_1(%arg0: i32, %arg1: i32) -> (i32, i32) {
    %c0_i32 = arith.constant 0 : i32
    %c0_i32_0 = arith.constant 0 : i32
    %c0_i32_1 = arith.constant 0 : i32
    return %c0_i32, %c0_i32_0 : i32, i32
  }
  func.func @transform_2(%arg0: i32, %arg1: i32) -> (i32, i32) {
    %c0_i32 = arith.constant 0 : i32
    %c0_i32_0 = arith.constant 0 : i32
    %c0_i32_1 = arith.constant 0 : i32
    return %c0_i32, %c0_i32_0 : i32, i32
  }
  func.func @transform_3(%arg0: i32, %arg1: i32) -> (i32, i32) {
    %c0_i32 = arith.constant 0 : i32
    %c0_i32_0 = arith.constant 0 : i32
    %c0_i32_1 = arith.constant 0 : i32
    return %c0_i32, %c0_i32_0 : i32, i32
  }
  func.func @transform_4(%arg0: i32, %arg1: i32) -> (i32, i32) {
    %c0_i32 = arith.constant 0 : i32
    %c0_i32_0 = arith.constant 0 : i32
    %c0_i32_1 = arith.constant 0 : i32
    return %c0_i32, %c0_i32_0 : i32, i32
  }
  func.func @transform_5(%arg0: i32, %arg1: i32) -> (i32, i32) {
    %c0_i32 = arith.constant 0 : i32
    %c0_i32_0 = arith.constant 0 : i32
    return %arg0, %c0_i32 : i32, i32
  }
}

</mosaic_0001>

<bundles_post_ra>
// kernel: tpu_custom_call.1
= control target key start
LH: loop header
LB: loop body
LE: loop exit
PB: predicated region body
PF: predicated region fallthrough
CT: control target
= control target key end

     0   :  { %10 = vsyncpa [#allocation4], 0  ;;  %s2825_s0 = inlined_call_operand.hbm [shape: f32[8,64,256], index: 0, kind: input, shape index: {}]   ;;  %s2826_s1 = inlined_call_operand.vmem [shape: f32[64,4], index: 1, kind: input, shape index: {}]   ;;  %s2827_s2 = inlined_call_operand.vmem [shape: f32[1,4], index: 2, kind: input, shape index: {}]   ;;  %s2828_s3 = inlined_call_operand.vmem [shape: f32[4,64], index: 3, kind: input, shape index: {}]   ;;  %s2829_s4 = inlined_call_operand.vmem [shape: f32[1,64], index: 4, kind: input, shape index: {}]   ;;  %s2830_s5 = inlined_call_operand.hbm [shape: f32[8,64], index: 5, kind: output, shape index: {}]  }
   0x1   :  { %11 = vsyncpa [#allocation5], 0  ;;  %s1676_s18 = smov [#allocation3]  }
   0x2   :  { %s17_s19 = sshll.u32 %s1676_s18, 4  ;;  %s18_s19 = int_to_ptr.vmem [resolvable:$true] %s17_s19 }
   0x3   :  { %s1640_s20 = scalar_lea.vmem %s18_s19, 16384  ;;  %p1645_p1 = scmp.lt.s32.totalorder %s18_s19, %s18_s19 }
   0x4   :  { %p1641_p0 = scmp.ne.s32.totalorder %s18_s19, %s1640_s20  ;;  %p1646_p2 = scmp.lt.s32.totalorder %s1640_s20, %s1640_s20 }
   0x6   :  { %p1647_p3 = por %p1646_p2, %p1645_p1 }
   0x8   :  { %p1648_p4 = pnand %p1647_p3, %p1641_p0 }
   0xa   :  { %1651 = shalt.err (!%p1648_p4)
}
   0xb   :  { %s1677_s21 = smov 256   ;;  %s1678_s22 = smov 16  }
   0xc   :  { %23 = dma.hbm_to_vmem [thread:$0]  %s2825_s0, 16384, %s18_s19, [#allocation4], %s1677_s21, %s1677_s21, %s1678_s22  }
   0xd   :  { %1672 = dma.done.wait [#allocation4], 16384  }
   0xe   :  { %1673 = vsyncadd [#allocation4], 4294950912  ;;  %v1715_v0 = vld [vmem:[#allocation3 + $0x80] sm:$0xff]  ;;  %v1717_v1 = vld [vmem:[#allocation3 + $0x88] sm:$0xff]  ;;  %vm39_vm0 = vcmask 523264   ;;  %vm439_vm1 = vcmask 130112  }
   0xf   :  { %2938 = vst [vmem:[#allocation9_spill] sm:$0xff] %v1715_v0  ;;  %2939 = vst [vmem:[#allocation10_spill] sm:$0xff] %v1717_v1  ;;  %v1719_v2 = vld [vmem:[#allocation3] sm:$0xff]  ;;  %v196_v3 = vadd.f32 %v1717_v1, %v1715_v0  ;;  %v1723_v4 = vld [vmem:[#allocation3 + $0x8] sm:$0xff]  ;;  %vm446_vm2 = vcmask 195712   ;;  %vm453_vm3 = vcmask 261312  }
  0x10   :  { %2940 = vst [vmem:[#allocation11_spill] sm:$0xff] %v1719_v2  ;;  %2941 = vst [vmem:[#allocation12_spill] sm:$0xff] %v1723_v4  ;;  %v1725_v5 = vld [vmem:[#allocation3 + $0x90] sm:$0xff]  ;;  %v1727_v6 = vld [vmem:[#allocation3 + $0x98] sm:$0xff]  ;;  %v172_v8 = vadd.f32 %v1723_v4, %v1719_v2  ;;  %vm460_vm4 = vcmask 326912   ;;  %vm467_vm5 = vcmask 392512  }
  0x11   :  { %2942 = vst [vmem:[#allocation13_spill] sm:$0xff] %v1725_v5  ;;  %2943 = vst [vmem:[#allocation14_spill] sm:$0xff] %v1727_v6  ;;  %v1733_v9 = vld [vmem:[#allocation3 + $0x10] sm:$0xff]  ;;  %v1735_v10 = vld [vmem:[#allocation3 + $0x18] sm:$0xff]  ;;  %197 = vadd.xlane.f32.xlu1 %v196_v3  ;;  %v199_v12 = vadd.f32 %v1727_v6, %v1725_v5  ;;  %vm474_vm6 = vcmask 458112   ;;  %vm481_vm7 = vcmask 523712  }
  0x12   :  { %2944 = vst [vmem:[#allocation15_spill] sm:$0xff] %v1733_v9  ;;  %2945 = vst [vmem:[#allocation16_spill] sm:$0xff] %v1735_v10  ;;  %173 = vadd.xlane.f32.xlu0 %v172_v8  ;;  %v175_v14 = vadd.f32 %v1735_v10, %v1733_v9  ;;  %v1745_v15 = vld [vmem:[#allocation3 + $0xa0] sm:$0xff]  ;;  %v1747_v16 = vld [vmem:[#allocation3 + $0xa8] sm:$0xff]  ;;  %vm756_vm8 = vcmask 1041409   ;;  %vm758_vm9 = vcmask 1042434  }
  0x13   :  { %2946 = vst [vmem:[#allocation17_spill] sm:$0xff] %v1745_v15  ;;  %2947 = vst [vmem:[#allocation18_spill] sm:$0xff] %v1747_v16  ;;  %v1749_v17 = vld [vmem:[#allocation3 + $0x20] sm:$0xff]  ;;  %v1751_v18 = vld [vmem:[#allocation3 + $0x28] sm:$0xff]  ;;  %v202_v20 = vadd.f32 %v1747_v16, %v1745_v15  ;;  %vm760_vm10 = vcmask 1043459   ;;  %vm762_vm11 = vcmask 1044484  }
  0x14   :  { %2948 = vst [vmem:[#allocation19_spill] sm:$0xff] %v1749_v17  ;;  %2949 = vst [vmem:[#allocation20_spill] sm:$0xff] %v1751_v18  ;;  %v178_v21 = vadd.f32 %v1751_v18, %v1749_v17  ;;  %v1759_v22 = vld [vmem:[#allocation3 + $0x110] sm:$0xff]  ;;  %v1761_v23 = vld [vmem:[#allocation3 + $0x118] sm:$0xff]  ;;  %vm764_vm12 = vcmask 1045509   ;;  %vm766_vm13 = vcmask 1046534  }
  0x15   :  { %200 = vadd.xlane.f32.xlu1 %v199_v12  ;;  %2950 = vst [vmem:[#allocation21_spill] sm:$0xff] %v1759_v22  ;;  %2951 = vst [vmem:[#allocation22_spill] sm:$0xff] %v1761_v23  ;;  %v1765_v25 = vld [vmem:[#allocation3 + $0x100] sm:$0xff]  ;;  %v1767_v26 = vld [vmem:[#allocation3 + $0x108] sm:$0xff]  ;;  %v223_v28 = vadd.f32 %v1761_v23, %v1759_v22  ;;  %vm768_vm14 = vcmask 1047559   ;;  %vm1475_vm15 = vcmask 1043456  }
  0x16   :  { %176 = vadd.xlane.f32.xlu0 %v175_v14  ;;  %2952 = vst [vmem:[#allocation23_spill] sm:$0xff] %v1765_v25  ;;  %2953 = vst [vmem:[#allocation24_spill] sm:$0xff] %v1767_v26  ;;  %v220_v29 = vadd.f32 %v1767_v26, %v1765_v25  ;;  %v1775_v30 = vld [vmem:[#allocation3 + $0xb0] sm:$0xff]  ;;  %v1777_v31 = vld [vmem:[#allocation3 + $0xb8] sm:$0xff] }
  0x17   :  { %2954 = vst [vmem:[#allocation25_spill] sm:$0xff] %v1775_v30  ;;  %2955 = vst [vmem:[#allocation26_spill] sm:$0xff] %v1777_v31  ;;  %v1779_v32 = vld [vmem:[#allocation3 + $0x30] sm:$0xff]  ;;  %v1781_v33 = vld [vmem:[#allocation3 + $0x38] sm:$0xff]  ;;  %v205_v36 = vadd.f32 %v1777_v31, %v1775_v30 }
  0x18   :  { %2956 = vst [vmem:[#allocation27_spill] sm:$0xff] %v1779_v32  ;;  %2957 = vst [vmem:[#allocation28_spill] sm:$0xff] %v1781_v33  ;;  %v181_v37 = vadd.f32 %v1781_v33, %v1779_v32  ;;  %v1791_v38 = vld [vmem:[#allocation3 + $0x180] sm:$0xff]  ;;  %v1793_v39 = vld [vmem:[#allocation3 + $0x188] sm:$0xff] }
  0x19   :  { %203 = vadd.xlane.f32.xlu1 %v202_v20  ;;  %2958 = vst [vmem:[#allocation29_spill] sm:$0xff] %v1791_v38  ;;  %2959 = vst [vmem:[#allocation30_spill] sm:$0xff] %v1793_v39  ;;  %v1795_v40 = vld [vmem:[#allocation3 + $0x120] sm:$0xff]  ;;  %v1797_v41 = vld [vmem:[#allocation3 + $0x128] sm:$0xff]  ;;  %v244_v44 = vadd.f32 %v1793_v39, %v1791_v38 }
  0x1a   :  { %179 = vadd.xlane.f32.xlu0 %v178_v21  ;;  %2960 = vst [vmem:[#allocation31_spill] sm:$0xff] %v1795_v40  ;;  %2961 = vst [vmem:[#allocation32_spill] sm:$0xff] %v1797_v41  ;;  %v226_v45 = vadd.f32 %v1797_v41, %v1795_v40  ;;  %v1807_v46 = vld [vmem:[#allocation3 + $0x40] sm:$0xff]  ;;  %v1809_v47 = vld [vmem:[#allocation3 + $0x48] sm:$0xff] }
  0x1b   :  { %2962 = vst [vmem:[#allocation33_spill] sm:$0xff] %v1807_v46  ;;  %2963 = vst [vmem:[#allocation34_spill] sm:$0xff] %v1809_v47  ;;  %v1811_v48 = vld [vmem:[#allocation3 + $0x190] sm:$0xff]  ;;  %v1813_v49 = vld [vmem:[#allocation3 + $0x198] sm:$0xff]  ;;  %v184_v55 = vadd.f32 %v1809_v47, %v1807_v46 }
  0x1c   :  { %2964 = vst [vmem:[#allocation35_spill] sm:$0xff] %v1811_v48  ;;  %2965 = vst [vmem:[#allocation36_spill] sm:$0xff] %v1813_v49  ;;  %v1815_v50 = vld [vmem:[#allocation3 + $0x130] sm:$0xff]  ;;  %v1817_v51 = vld [vmem:[#allocation3 + $0x138] sm:$0xff]  ;;  %v247_v61 = vadd.f32 %v1813_v49, %v1811_v48 }
  0x1d   :  { %224 = vadd.xlane.f32.xlu1 %v223_v28  ;;  %2966 = vst [vmem:[#allocation37_spill] sm:$0xff] %v1815_v50  ;;  %2967 = vst [vmem:[#allocation38_spill] sm:$0xff] %v1817_v51  ;;  %v1819_v52 = vld [vmem:[#allocation3 + $0xf0] sm:$0xff]  ;;  %v1827_v56 = vld [vmem:[#allocation3 + $0xc0] sm:$0xff]  ;;  %v229_v62 = vadd.f32 %v1817_v51, %v1815_v50 }
  0x1e   :  { %221 = vadd.xlane.f32.xlu0 %v220_v29  ;;  %2968 = vst [vmem:[#allocation39_spill] sm:$0xff] %v1827_v56  ;;  %v1829_v57 = vld [vmem:[#allocation3 + $0xc8] sm:$0xff]  ;;  %v1831_v58 = vld [vmem:[#allocation3 + $0xf8] sm:$0xff]  ;;  %v1833_v59 = vld [vmem:[#allocation3 + $0x70] sm:$0xff] }
  0x1f   :  { %2969 = vst [vmem:[#allocation40_spill] sm:$0xff] %v1829_v57  ;;  %v1835_v60 = vld [vmem:[#allocation3 + $0x78] sm:$0xff]  ;;  %v1843_v3 = vld [vmem:[#allocation3 + $0x1d0] sm:$0xff]  ;;  %v1847_v12 = vld [vmem:[#allocation3 + $0x160] sm:$0xff]  ;;  %v208_v34 = vadd.f32 %v1829_v57, %v1827_v56 }
  0x20   :  { %v1845_v8 = vld [vmem:[#allocation3 + $0x1d8] sm:$0xff]  ;;  %v1851_v20 = vld [vmem:[#allocation3 + $0x168] sm:$0xff]  ;;  %v1853_v21 = vld [vmem:[#allocation3 + $0x2b0] sm:$0xff] }
  0x21   :  { %206 = vadd.xlane.f32.xlu1 %v205_v36  ;;  %v1855_v28 = vld [vmem:[#allocation3 + $0x2b8] sm:$0xff]  ;;  %v1857_v29 = vld [vmem:[#allocation3 + $0x200] sm:$0xff]  ;;  %v1859_v36 = vld [vmem:[#allocation3 + $0x208] sm:$0xff] }
  0x22   :  { %182 = vadd.xlane.f32.xlu0 %v181_v37  ;;  %2970 = vst [vmem:[#allocation41_spill] sm:$0xff] %v1857_v29  ;;  %2971 = vst [vmem:[#allocation42_spill] sm:$0xff] %v1859_v36  ;;  %v1867_v63 = vld [vmem:[#allocation3 + $0x248] sm:$0xff]  ;;  %v1869_v14 = vld [vmem:[#allocation3 + $0x380] sm:$0xff]  ;;  %v268_v46 = vadd.f32 %v1859_v36, %v1857_v29 }
  0x23   :  { %v1873_v54 = vld [vmem:[#allocation3 + $0x1a0] sm:$0xff]  ;;  %v1875_v53 = vld [vmem:[#allocation3 + $0x1a8] sm:$0xff]  ;;  %v1895_v24 = vld [vmem:[#allocation3 + $0x170] sm:$0xff] }
  0x24   :  { %2972 = vst [vmem:[#allocation43_spill] sm:$0xff] %v1873_v54  ;;  %2973 = vst [vmem:[#allocation44_spill] sm:$0xff] %v1875_v53  ;;  %v1879_v43 = vld [vmem:[#allocation3 + $0x388] sm:$0xff]  ;;  %v1897_v19 = vld [vmem:[#allocation3 + $0x178] sm:$0xff] }
  0x25   :  { %245 = vadd.xlane.f32.xlu1 %v244_v44  ;;  %v1881_v44 = vld [vmem:[#allocation3 + $0x320] sm:$0xff]  ;;  %v1883_v42 = vld [vmem:[#allocation3 + $0x328] sm:$0xff]  ;;  %v1899_v13 = vld [vmem:[#allocation3 + $0x390] sm:$0xff] }
  0x26   :  { %227 = vadd.xlane.f32.xlu0 %v226_v45  ;;  %v1865_v45 = vld [vmem:[#allocation3 + $0x240] sm:$0xff]  ;;  %v1907_v7 = vld [vmem:[#allocation3 + $0x258] sm:$0xff]  ;;  %v1909_v11 = vld [vmem:[#allocation3 + $0x50] sm:$0xff] }
  0x27   :  { %2974 = vst [vmem:[#allocation45_spill] sm:$0xff] %v1909_v11  ;;  %v1911_v27 = vld [vmem:[#allocation3 + $0x58] sm:$0xff]  ;;  %v1917_v48 = vld [vmem:[#allocation3 + $0x1e0] sm:$0xff]  ;;  %v1919_v47 = vld [vmem:[#allocation3 + $0x1e8] sm:$0xff] }
  0x28   :  { %2975 = vst [vmem:[#allocation46_spill] sm:$0xff] %v1911_v27  ;;  %v1921_v35 = vld [vmem:[#allocation3 + $0x330] sm:$0xff]  ;;  %v1927_v40 = vld [vmem:[#allocation3 + $0x218] sm:$0xff]  ;;  %v1933_v49 = vld [vmem:[#allocation3 + $0x2c0] sm:$0xff]  ;;  %v187_v32 = vadd.f32 %v1911_v27, %v1909_v11 }
  0x29   :  { %185 = vadd.xlane.f32.xlu1 %v184_v55  ;;  %v1903_v55 = vld [vmem:[#allocation3 + $0x398] sm:$0xff]  ;;  %v1925_v41 = vld [vmem:[#allocation3 + $0x210] sm:$0xff]  ;;  %2977 = vst [vmem:[#allocation48_spill] sm:$0xff] %v1927_v40  ;;  %2979 = vst [vmem:[#allocation50_spill] sm:$0xff] %v1933_v49 }
  0x2a   :  { %248 = vadd.xlane.f32.xlu0 %v247_v61  ;;  %v1905_v61 = vld [vmem:[#allocation3 + $0x250] sm:$0xff]  ;;  %2976 = vst [vmem:[#allocation47_spill] sm:$0xff] %v1925_v41  ;;  %v1931_v39 = vld [vmem:[#allocation3 + $0x338] sm:$0xff]  ;;  %v1935_v38 = vld [vmem:[#allocation3 + $0x2c8] sm:$0xff]  ;;  %v271_v5 = vadd.f32 %v1927_v40, %v1925_v41 }
  0x2b   :  { %2978 = vst [vmem:[#allocation49_spill] sm:$0xff] %v1931_v39  ;;  %2980 = vst [vmem:[#allocation51_spill] sm:$0xff] %v1935_v38  ;;  %v1945_v37 = vld [vmem:[#allocation3 + $0x1f0] sm:$0xff]  ;;  %v1947_v30 = vld [vmem:[#allocation3 + $0x1f8] sm:$0xff] }
  0x2c   :  { %2981 = vst [vmem:[#allocation52_spill] sm:$0xff] %v1945_v37  ;;  %2982 = vst [vmem:[#allocation53_spill] sm:$0xff] %v1947_v30  ;;  %v1949_v26 = vld [vmem:[#allocation3 + $0x3a0] sm:$0xff]  ;;  %v1953_v33 = vld [vmem:[#allocation3 + $0x3a8] sm:$0xff] }
  0x2d   :  { %230 = vadd.xlane.f32.xlu1 %v229_v62  ;;  %v250_v62 = vadd.f32 %v1875_v53, %v1873_v54  ;;  %2983 = vst [vmem:[#allocation54_spill] sm:$0xff] %v1949_v26  ;;  %2984 = vst [vmem:[#allocation55_spill] sm:$0xff] %v1953_v33  ;;  %v1957_v51 = vld [vmem:[#allocation3 + $0x2d8] sm:$0xff]  ;;  %v1961_v50 = vld [vmem:[#allocation3 + $0x140] sm:$0xff] }
  0x2e   :  { %209 = vadd.xlane.f32.xlu0 %v208_v34  ;;  %v1955_v34 = vld [vmem:[#allocation3 + $0x2d0] sm:$0xff]  ;;  %2986 = vst [vmem:[#allocation57_spill] sm:$0xff] %v1957_v51  ;;  %2987 = vst [vmem:[#allocation58_spill] sm:$0xff] %v1961_v50  ;;  %v1963_v31 = vld [vmem:[#allocation3 + $0x148] sm:$0xff] }
  0x2f   :  { %2985 = vst [vmem:[#allocation56_spill] sm:$0xff] %v1955_v34  ;;  %2988 = vst [vmem:[#allocation59_spill] sm:$0xff] %v1963_v31  ;;  %v1969_v25 = vld [vmem:[#allocation3 + $0x260] sm:$0xff]  ;;  %v1971_v18 = vld [vmem:[#allocation3 + $0x268] sm:$0xff]  ;;  %v232_v2 = vadd.f32 %v1963_v31, %v1961_v50 }
  0x30   :  { %2989 = vst [vmem:[#allocation60_spill] sm:$0xff] %v1969_v25  ;;  %2990 = vst [vmem:[#allocation61_spill] sm:$0xff] %v1971_v18  ;;  %v1973_v17 = vld [vmem:[#allocation3 + $0x3b0] sm:$0xff]  ;;  %v1979_v56 = vld [vmem:[#allocation3 + $0xd8] sm:$0xff] }
  0x31   :  { %2991 = vst [vmem:[#allocation62_spill] sm:$0xff] %v1973_v17  ;;  %269 = vadd.xlane.f32.xlu1 %v268_v46  ;;  %v1977_v57 = vld [vmem:[#allocation3 + $0xd0] sm:$0xff]  ;;  %2993 = vst [vmem:[#allocation64_spill] sm:$0xff] %v1979_v56  ;;  %v1983_v16 = vld [vmem:[#allocation3 + $0x3b8] sm:$0xff] }
  0x32   :  { %2992 = vst [vmem:[#allocation63_spill] sm:$0xff] %v1977_v57  ;;  %2994 = vst [vmem:[#allocation65_spill] sm:$0xff] %v1983_v16  ;;  %v1985_v22 = vld [vmem:[#allocation3 + $0x340] sm:$0xff]  ;;  %v1987_v15 = vld [vmem:[#allocation3 + $0x348] sm:$0xff]  ;;  %251 = vadd.xlane.f32.xlu0 %v250_v62 }
  0x33   :  { %2995 = vst [vmem:[#allocation66_spill] sm:$0xff] %v1985_v22  ;;  %2996 = vst [vmem:[#allocation67_spill] sm:$0xff] %v1987_v15  ;;  %v1999_v9 = vld [vmem:[#allocation3 + $0x2e0] sm:$0xff]  ;;  %v2001_v1 = vld [vmem:[#allocation3 + $0x2e8] sm:$0xff] }
  0x34   :  { %2997 = vst [vmem:[#allocation68_spill] sm:$0xff] %v1999_v9  ;;  %2998 = vst [vmem:[#allocation69_spill] sm:$0xff] %v2001_v1  ;;  %v2003_v0 = vld [vmem:[#allocation3 + $0x270] sm:$0xff]  ;;  %v2007_v46 = vld [vmem:[#allocation3 + $0x278] sm:$0xff] }
  0x35   :  { %2999 = vst [vmem:[#allocation70_spill] sm:$0xff] %v2003_v0  ;;  %3000 = vst [vmem:[#allocation71_spill] sm:$0xff] %v2007_v46  ;;  %v2009_v62 = vld [vmem:[#allocation3 + $0x3c0] sm:$0xff]  ;;  %v2011_v53 = vld [vmem:[#allocation3 + $0x3c8] sm:$0xff]  ;;  %188 = vadd.xlane.f32.xlu1 %v187_v32  ;;  %v211_v32 = vadd.f32 %v1979_v56, %v1977_v57 }
  0x36   :  { %3001 = vst [vmem:[#allocation72_spill] sm:$0xff] %v2009_v62  ;;  %3002 = vst [vmem:[#allocation73_spill] sm:$0xff] %v2011_v53  ;;  %v2013_v54 = vld [vmem:[#allocation3 + $0x220] sm:$0xff]  ;;  %v2015_v10 = vld [vmem:[#allocation3 + $0x228] sm:$0xff]  ;;  %272 = vadd.xlane.f32.xlu0 %v271_v5 }
  0x37   :  { %3003 = vst [vmem:[#allocation74_spill] sm:$0xff] %v2013_v54  ;;  %3004 = vst [vmem:[#allocation75_spill] sm:$0xff] %v2015_v10  ;;  %v2021_v29 = vld [vmem:[#allocation3 + $0x350] sm:$0xff]  ;;  %v2023_v4 = vld [vmem:[#allocation3 + $0x358] sm:$0xff]  ;;  %v274_v22 = vadd.f32 %v2015_v10, %v2013_v54 }
  0x38   :  { %3005 = vst [vmem:[#allocation76_spill] sm:$0xff] %v2021_v29  ;;  %3006 = vst [vmem:[#allocation77_spill] sm:$0xff] %v2023_v4  ;;  %v2025_v6 = vld [vmem:[#allocation3 + $0x360] sm:$0xff]  ;;  %v2029_v1 = vld [vmem:[#allocation3 + $0x1b0] sm:$0xff] }
  0x39   :  { %3007 = vst [vmem:[#allocation78_spill] sm:$0xff] %v2025_v6  ;;  %3008 = vst [vmem:[#allocation79_spill] sm:$0xff] %v2029_v1  ;;  %v2031_v9 = vld [vmem:[#allocation3 + $0x1b8] sm:$0xff]  ;;  %v2035_v46 = vld [vmem:[#allocation3 + $0x368] sm:$0xff]  ;;  %233 = vadd.xlane.f32.xlu1 %v232_v2 }
  0x3a   :  { %3009 = vst [vmem:[#allocation80_spill] sm:$0xff] %v2031_v9  ;;  %3010 = vst [vmem:[#allocation81_spill] sm:$0xff] %v2035_v46  ;;  %v2037_v36 = vld [vmem:[#allocation3 + $0x2f0] sm:$0xff]  ;;  %v2039_v53 = vld [vmem:[#allocation3 + $0x2f8] sm:$0xff]  ;;  %212 = vadd.xlane.f32.xlu0 %v211_v32  ;;  %v253_v11 = vadd.f32 %v2031_v9, %v2029_v1 }
  0x3b   :  { %3011 = vst [vmem:[#allocation82_spill] sm:$0xff] %v2037_v36  ;;  %3012 = vst [vmem:[#allocation83_spill] sm:$0xff] %v2039_v53  ;;  %v2049_v23 = vld [vmem:[#allocation3 + $0x370] sm:$0xff]  ;;  %v2051_v4 = vld [vmem:[#allocation3 + $0x378] sm:$0xff] }
  0x3c   :  { %3013 = vst [vmem:[#allocation84_spill] sm:$0xff] %v2049_v23  ;;  %3014 = vst [vmem:[#allocation85_spill] sm:$0xff] %v2051_v4  ;;  %v2053_v29 = vld [vmem:[#allocation3 + $0x3d0] sm:$0xff]  ;;  %v2057_v62 = vld [vmem:[#allocation3 + $0x3d8] sm:$0xff]  ;;  %v217_v4 = vadd.f32 %v1831_v58, %v1819_v52 }
  0x3d   :  { %3015 = vst [vmem:[#allocation86_spill] sm:$0xff] %v2053_v29  ;;  %3016 = vst [vmem:[#allocation87_spill] sm:$0xff] %v2057_v62  ;;  %v2059_v5 = vld [vmem:[#allocation3 + $0x3e0] sm:$0xff]  ;;  %v2061_v27 = vld [vmem:[#allocation3 + $0x3e8] sm:$0xff]  ;;  %275 = vadd.xlane.f32.xlu1 %v274_v22 }
  0x3e   :  { %3017 = vst [vmem:[#allocation88_spill] sm:$0xff] %v2059_v5  ;;  %3018 = vst [vmem:[#allocation89_spill] sm:$0xff] %v2061_v27  ;;  %v2069_v53 = vld [vmem:[#allocation3 + $0x3f0] sm:$0xff]  ;;  %v2071_v36 = vld [vmem:[#allocation3 + $0x3f8] sm:$0xff]  ;;  %254 = vadd.xlane.f32.xlu0 %v253_v11 }
  0x3f   :  { %3019 = vst [vmem:[#allocation90_spill] sm:$0xff] %v2069_v53  ;;  %3020 = vst [vmem:[#allocation91_spill] sm:$0xff] %v2071_v36  ;;  %v2083_v40 = vld [vmem:[#allocation3 + $0x290] sm:$0xff]  ;;  %v2085_v41 = vld [vmem:[#allocation3 + $0x298] sm:$0xff] }
  0x40   :  { %3021 = vst [vmem:[#allocation92_spill] sm:$0xff] %v2083_v40  ;;  %3022 = vst [vmem:[#allocation93_spill] sm:$0xff] %v2085_v41  ;;  %v2087_v2 = vld [vmem:[#allocation3 + $0x280] sm:$0xff]  ;;  %v2089_v27 = vld [vmem:[#allocation3 + $0x288] sm:$0xff]  ;;  %v295_v32 = vadd.f32 %v2085_v41, %v2083_v40 }
  0x41   :  { %3023 = vst [vmem:[#allocation94_spill] sm:$0xff] %v2087_v2  ;;  %3024 = vst [vmem:[#allocation95_spill] sm:$0xff] %v2089_v27  ;;  %v292_v15 = vadd.f32 %v2089_v27, %v2087_v2  ;;  %v2099_v56 = vld [vmem:[#allocation3 + $0xe0] sm:$0xff]  ;;  %v2101_v57 = vld [vmem:[#allocation3 + $0xe8] sm:$0xff] }
  0x42   :  { %3025 = vst [vmem:[#allocation96_spill] sm:$0xff] %v2099_v56  ;;  %3026 = vst [vmem:[#allocation97_spill] sm:$0xff] %v2101_v57  ;;  %v2103_v31 = vld [vmem:[#allocation3 + $0x60] sm:$0xff]  ;;  %v2105_v50 = vld [vmem:[#allocation3 + $0x68] sm:$0xff]  ;;  %296 = vadd.xlane.f32.xlu1 %v295_v32  ;;  %v214_v11 = vadd.f32 %v2101_v57, %v2099_v56 }
  0x43   :  { %3027 = vst [vmem:[#allocation98_spill] sm:$0xff] %v2103_v31  ;;  %3028 = vst [vmem:[#allocation99_spill] sm:$0xff] %v2105_v50  ;;  %293 = vadd.xlane.f32.xlu0 %v292_v15  ;;  %v190_v0 = vadd.f32 %v2105_v50, %v2103_v31  ;;  %v2115_v9 = vld [vmem:[#allocation3 + $0x1c0] sm:$0xff]  ;;  %v2117_v1 = vld [vmem:[#allocation3 + $0x1c8] sm:$0xff] }
  0x44   :  { %v2119_v10 = vld [vmem:[#allocation3 + $0x150] sm:$0xff]  ;;  %v2121_v54 = vld [vmem:[#allocation3 + $0x158] sm:$0xff]  ;;  %v256_v15 = vadd.f32 %v2117_v1, %v2115_v9  ;;  %v2131_v27 = vld [vmem:[#allocation3 + $0x2a0] sm:$0xff] }
  0x45   :  { %3029 = vst [vmem:[#allocation100_spill] sm:$0xff] %v2119_v10  ;;  %3030 = vst [vmem:[#allocation101_spill] sm:$0xff] %v2121_v54  ;;  %v235_v22 = vadd.f32 %v2121_v54, %v2119_v10  ;;  %v2133_v2 = vld [vmem:[#allocation3 + $0x2a8] sm:$0xff]  ;;  %v2135_v41 = vld [vmem:[#allocation3 + $0x230] sm:$0xff]  ;;  %v301_v10 = vadd.f32 %v1855_v28, %v1853_v21 }
  0x46   :  { %215 = vadd.xlane.f32.xlu1 %v214_v11  ;;  %v2137_v40 = vld [vmem:[#allocation3 + $0x238] sm:$0xff]  ;;  %v2147_v50 = vld [vmem:[#allocation3 + $0x310] sm:$0xff]  ;;  %v2151_v57 = vld [vmem:[#allocation3 + $0x300] sm:$0xff] }
  0x47   :  { %191 = vadd.xlane.f32.xlu0 %v190_v0  ;;  %v298_v0 = vadd.f32 %v2133_v2, %v2131_v27  ;;  %v277_v32 = vadd.f32 %v2137_v40, %v2135_v41  ;;  %v2149_v31 = vld [vmem:[#allocation3 + $0x318] sm:$0xff]  ;;  %v2153_v56 = vld [vmem:[#allocation3 + $0x308] sm:$0xff] }
  0x48   :  { %v316_v11 = vadd.f32 %v2153_v56, %v2151_v57  ;;  %v3032_v54 = vld [vmem:[#allocation67_spill] sm:$0xff] }
  0x4a   :  { %257 = vadd.xlane.f32.xlu1 %v256_v15  ;;  %v238_v15 = vadd.f32 %v1851_v20, %v1847_v12 }
  0x4b   :  { %236 = vadd.xlane.f32.xlu0 %v235_v22  ;;  %v319_v22 = vadd.f32 %v2149_v31, %v2147_v50 }
  0x4e   :  { %299 = vadd.xlane.f32.xlu1 %v298_v0  ;;  %v193_v0 = vadd.f32 %v1835_v60, %v1833_v59 }
  0x4f   :  { %278 = vadd.xlane.f32.xlu0 %v277_v32  ;;  %v259_v32 = vadd.f32 %v1845_v8, %v1843_v3 }
  0x52   :  { %320 = vadd.xlane.f32.xlu1 %v319_v22  ;;  %v280_v22 = vadd.f32 %v1867_v63, %v1865_v45 }
  0x53   :  { %317 = vadd.xlane.f32.xlu0 %v316_v11  ;;  %v340_v11 = vadd.f32 %v1879_v43, %v1869_v14 }
  0x56   :  { %218 = vadd.xlane.f32.xlu1 %v217_v4  ;;  %v322_v4 = vadd.f32 %v1883_v42, %v1881_v44 }
  0x57   :  { %194 = vadd.xlane.f32.xlu0 %v193_v0  ;;  %v241_v0 = vadd.f32 %v1897_v19, %v1895_v24 }
  0x5a   :  { %260 = vadd.xlane.f32.xlu1 %v259_v32  ;;  %v343_v32 = vadd.f32 %v1903_v55, %v1899_v13 }
  0x5b   :  { %239 = vadd.xlane.f32.xlu0 %v238_v15  ;;  %v283_v15 = vadd.f32 %v1907_v7, %v1905_v61 }
  0x5e   :  { %302 = vadd.xlane.f32.xlu1 %v301_v10  ;;  %v262_v10 = vadd.f32 %v1919_v47, %v1917_v48 }
  0x5f   :  { %281 = vadd.xlane.f32.xlu0 %v280_v22  ;;  %v325_v22 = vadd.f32 %v1931_v39, %v1921_v35  ;;  %v3123_v39 = vld [vmem:[#allocation96_spill] sm:$0xff] }
  0x62   :  { %341 = vadd.xlane.f32.xlu1 %v340_v11  ;;  %v304_v11 = vadd.f32 %v1935_v38, %v1933_v49  ;;  %v3106_v38 = vld [vmem:[#allocation59_spill] sm:$0xff] }
  0x63   :  { %323 = vadd.xlane.f32.xlu0 %v322_v4  ;;  %v265_v4 = vadd.f32 %v1947_v30, %v1945_v37  ;;  %v3034_v37 = vld [vmem:[#allocation69_spill] sm:$0xff]  ;;  %v3112_v49 = vld [vmem:[#allocation75_spill] sm:$0xff] }
  0x66   :  { %242 = vadd.xlane.f32.xlu1 %v241_v0  ;;  %v346_v0 = vadd.f32 %v1953_v33, %v1949_v26  ;;  %v3036_v26 = vld [vmem:[#allocation71_spill] sm:$0xff] }
  0x67   :  { %344 = vadd.xlane.f32.xlu0 %v343_v32  ;;  %v307_v32 = vadd.f32 %v1957_v51, %v1955_v34  ;;  %v3038_v34 = vld [vmem:[#allocation73_spill] sm:$0xff] }
  0x6a   :  { %284 = vadd.xlane.f32.xlu1 %v283_v15  ;;  %v286_v15 = vadd.f32 %v1971_v18, %v1969_v25  ;;  %v3040_v25 = vld [vmem:[#allocation77_spill] sm:$0xff] }
  0x6b   :  { %263 = vadd.xlane.f32.xlu0 %v262_v10  ;;  %v349_v10 = vadd.f32 %v1983_v16, %v1973_v17  ;;  %v3094_v17 = vld [vmem:[#allocation42_spill] sm:$0xff] }
  0x6e   :  { %326 = vadd.xlane.f32.xlu1 %v325_v22  ;;  %v3031_v22 = vld [vmem:[#allocation66_spill] sm:$0xff] }
  0x6f   :  { %305 = vadd.xlane.f32.xlu0 %v304_v11  ;;  %v328_v30 = vadd.f32 %v3032_v54, %v3031_v22  ;;  %v3033_v11 = vld [vmem:[#allocation68_spill] sm:$0xff]  ;;  %v3042_v54 = vld [vmem:[#allocation83_spill] sm:$0xff] }
  0x70   :  { %v310_v33 = vadd.f32 %v3034_v37, %v3033_v11 }
  0x72   :  { %266 = vadd.xlane.f32.xlu1 %v265_v4  ;;  %v3035_v4 = vld [vmem:[#allocation70_spill] sm:$0xff] }
  0x73   :  { %347 = vadd.xlane.f32.xlu0 %v346_v0  ;;  %v289_v51 = vadd.f32 %v3036_v26, %v3035_v4  ;;  %v3037_v0 = vld [vmem:[#allocation72_spill] sm:$0xff] }
  0x74   :  { %v352_v18 = vadd.f32 %v3038_v34, %v3037_v0 }
  0x76   :  { %308 = vadd.xlane.f32.xlu1 %v307_v32  ;;  %v3039_v32 = vld [vmem:[#allocation76_spill] sm:$0xff] }
  0x77   :  { %287 = vadd.xlane.f32.xlu0 %v286_v15  ;;  %v331_v16 = vadd.f32 %v3040_v25, %v3039_v32  ;;  %v334_v15 = vadd.f32 %v2035_v46, %v2025_v6  ;;  %v3045_v25 = vld [vmem:[#allocation11_spill] sm:$0xff]  ;;  %v3046_v32 = vld [vmem:[#allocation12_spill] sm:$0xff] }
  0x78   :  { %v3047_v46 = vmax.f32 %v3045_v25, %v3046_v32  ;;  %v3057_v32 = vld [vmem:[#allocation17_spill] sm:$0xff] }
  0x7a   :  { %350 = vadd.xlane.f32.xlu1 %v349_v10  ;;  %v3041_v10 = vld [vmem:[#allocation82_spill] sm:$0xff] }
  0x7b   :  { %329 = vadd.xlane.f32.xlu0 %v328_v30  ;;  %v313_v37 = vadd.f32 %v3042_v54, %v3041_v10  ;;  %v3043_v30 = vld [vmem:[#allocation85_spill] sm:$0xff]  ;;  %v3049_v54 = vld [vmem:[#allocation10_spill] sm:$0xff] }
  0x7c   :  { %v337_v26 = vadd.f32 %v3043_v30, %v2049_v23  ;;  %v428_v30 = vlaneseq  ;;  %v3051_v23 = vld [vmem:[#allocation15_spill] sm:$0xff] }
  0x7e   :  { %311 = vadd.xlane.f32.xlu1 %v310_v33  ;;  %v355_v33 = vadd.f32 %v2057_v62, %v2053_v29  ;;  %v3052_v62 = vld [vmem:[#allocation16_spill] sm:$0xff] }
  0x7f   :  { %290 = vadd.xlane.f32.xlu0 %v289_v51  ;;  %v3044_v51 = vld [vmem:[#allocation89_spill] sm:$0xff] }
  0x82   :  { %353 = vadd.xlane.f32.xlu1 %v352_v18  ;;  %v358_v18 = vadd.f32 %v3044_v51, %v2059_v5  ;;  %v3054_v51 = vld [vmem:[#allocation13_spill] sm:$0xff]  ;;  %v3055_v5 = vld [vmem:[#allocation14_spill] sm:$0xff] }
  0x83   :  { %332 = vadd.xlane.f32.xlu0 %v331_v16  ;;  %v3048_v16 = vld [vmem:[#allocation9_spill] sm:$0xff]  ;;  %v3056_v25 = vmax.f32 %v3054_v51, %v3055_v5  ;;  %v1679_v51 = vmov 0.0  }
  0x84   :  { %40 = vst.msk [vmem:[#allocation2] sm:$0xff] %vm39_vm0, %v1679_v51 }
  0x86   :  { %335 = vadd.xlane.f32.xlu1 %v334_v15  ;;  %v3050_v15 = vmax.f32 %v3048_v16, %v3049_v54 }
  0x87   :  { %314 = vadd.xlane.f32.xlu0 %v313_v37  ;;  %v361_v37 = vadd.f32 %v2071_v36, %v2069_v53  ;;  %v3061_v36 = vld [vmem:[#allocation20_spill] sm:$0xff] }
  0x8a   :  { %338 = vadd.xlane.f32.xlu1 %v337_v26  ;;  %v3053_v26 = vmax.f32 %v3051_v23, %v3052_v62 }
  0x8b   :  { %356 = vadd.xlane.f32.xlu0 %v355_v33  ;;  %v2236_v33 = vand.u32 127, %v428_v30 }
  0x8d   :  { %v434_v54 = vadd.s32 4294967288, %v2236_v33 }
  0x8e   :  { %777 = vmax.xlane.f32.xlu1 %v3047_v46  ;;  %v2241_v46 = vshrl.u32 %v428_v30, 7  ;;  %v441_v30 = vadd.s32 4294967280, %v2236_v33 }
  0x8f   :  { %359 = vadd.xlane.f32.xlu0 %v358_v18  ;;  %v3058_v18 = vld [vmem:[#allocation18_spill] sm:$0xff] }
  0x90   :  { %v3059_v16 = vmax.f32 %v3057_v32, %v3058_v18  ;;  %v2252_v23 = vsub.s32 %v2236_v33, %v2241_v46  ;;  %v2255_v5 = vsub.s32 %v434_v54, %v2241_v46  ;;  %v2268_v10 = vsub.s32 %v441_v30, %v2241_v46 }
  0x92   :  { %801 = vmax.xlane.f32.xlu1 %v3050_v15  ;;  %v3060_v15 = vld [vmem:[#allocation19_spill] sm:$0xff] }
  0x93   :  { %780 = vmax.xlane.f32.xlu0 %v3053_v26  ;;  %v3062_v53 = vmax.f32 %v3060_v15, %v3061_v36  ;;  %v3063_v26 = vld [vmem:[#allocation21_spill] sm:$0xff]  ;;  %v3067_v36 = vld [vmem:[#allocation24_spill] sm:$0xff] }
  0x96   :  { %362 = vadd.xlane.f32.xlu1 %v361_v37 }
  0x97   :  { %804 = vmax.xlane.f32.xlu0 %v3056_v25  ;;  %v3064_v25 = vld [vmem:[#allocation22_spill] sm:$0xff] }
  0x98   :  { %v3065_v32 = vmax.f32 %v3063_v26, %v3064_v25  ;;  %v3069_v25 = vld [vmem:[#allocation25_spill] sm:$0xff] }
  0x9a   :  { %807 = vmax.xlane.f32.xlu1 %v3059_v16  ;;  %v198_v62 = vpop.xlane.xlu1 %197 }
  0x9b   :  { %783 = vmax.xlane.f32.xlu0 %v3062_v53  ;;  %v174_v37 = vpop.xlane.xlu0 %173  ;;  %v3066_v53 = vld [vmem:[#allocation23_spill] sm:$0xff]  ;;  %v486_v15 = vrot.slane %v198_v62, %v2252_v23  ;;  %v3073_v62 = vld [vmem:[#allocation28_spill] sm:$0xff] }
  0x9c   :  { %v3068_v18 = vmax.f32 %v3066_v53, %v3067_v36  ;;  %v433_v51 = vrot.slane %v174_v37, %v2252_v23  ;;  %v448_v37 = vadd.s32 4294967272, %v2236_v33 }
  0x9e   :  { %828 = vmax.xlane.f32.xlu1 %v3065_v32  ;;  %v201_v16 = vpop.xlane.xlu1 %200  ;;  %v3070_v32 = vld [vmem:[#allocation26_spill] sm:$0xff]  ;;  %v2293_v4 = vsub.s32 %v448_v37, %v2241_v46  ;;  %v455_v37 = vadd.s32 4294967264, %v2236_v33 }
  0x9f   :  { %825 = vmax.xlane.f32.xlu0 %v3068_v18  ;;  %v490_v54 = vrot.slane %v201_v16, %v2255_v5  ;;  %v177_v29 = vpop.xlane.xlu0 %176  ;;  %v3071_v53 = vmax.f32 %v3069_v25, %v3070_v32  ;;  %v3072_v18 = vld [vmem:[#allocation27_spill] sm:$0xff]  ;;  %v3076_v25 = vld [vmem:[#allocation30_spill] sm:$0xff] }
  0xa0   :  { %v438_v6 = vrot.slane %v177_v29, %v2255_v5  ;;  %v3074_v34 = vmax.f32 %v3072_v18, %v3073_v62 }
  0xa1   :  { %v491_v26 = vsel %vm439_vm1, %v490_v54, %v486_v15  ;;  %v3075_v54 = vld [vmem:[#allocation29_spill] sm:$0xff] }
  0xa2   :  { %810 = vmax.xlane.f32.xlu1 %v3071_v53  ;;  %v440_v36 = vsel %vm439_vm1, %v438_v6, %v433_v51  ;;  %v204_v16 = vpop.xlane.xlu1 %203  ;;  %v3077_v32 = vmax.f32 %v3075_v54, %v3076_v25  ;;  %v3078_v51 = vld [vmem:[#allocation31_spill] sm:$0xff]  ;;  %v3079_v53 = vld [vmem:[#allocation32_spill] sm:$0xff] }
  0xa3   :  { %786 = vmax.xlane.f32.xlu0 %v3074_v34  ;;  %v495_v30 = vrot.slane %v204_v16, %v2268_v10  ;;  %v180_v0 = vpop.xlane.xlu0 %179  ;;  %v3080_v34 = vmax.f32 %v3078_v51, %v3079_v53 }
  0xa4   :  { %v445_v29 = vrot.slane %v180_v0, %v2268_v10 }
  0xa5   :  { %v496_v15 = vsel %vm446_vm2, %v495_v30, %v491_v26  ;;  %v3081_v26 = vld [vmem:[#allocation33_spill] sm:$0xff]  ;;  %v3082_v30 = vld [vmem:[#allocation34_spill] sm:$0xff] }
  0xa6   :  { %849 = vmax.xlane.f32.xlu1 %v3077_v32  ;;  %v447_v6 = vsel %vm446_vm2, %v445_v29, %v440_v36  ;;  %v225_v18 = vpop.xlane.xlu1 %224  ;;  %v3083_v11 = vmax.f32 %v3081_v26, %v3082_v30  ;;  %v3084_v36 = vld [vmem:[#allocation35_spill] sm:$0xff]  ;;  %v3085_v29 = vld [vmem:[#allocation36_spill] sm:$0xff]  ;;  %v3088_v26 = vld [vmem:[#allocation38_spill] sm:$0xff] }
  0xa7   :  { %831 = vmax.xlane.f32.xlu0 %v3080_v34  ;;  %v529_v62 = vrot.slane %v225_v18, %v2255_v5  ;;  %v222_v16 = vpop.xlane.xlu0 %221  ;;  %v3086_v25 = vmax.f32 %v3084_v36, %v3085_v29  ;;  %v3091_v30 = vld [vmem:[#allocation40_spill] sm:$0xff] }
  0xa8   :  { %v525_v0 = vrot.slane %v222_v16, %v2252_v23  ;;  %v3087_v16 = vld [vmem:[#allocation37_spill] sm:$0xff] }
  0xaa   :  { %789 = vmax.xlane.f32.xlu1 %v3083_v11  ;;  %v530_v54 = vsel %vm439_vm1, %v529_v62, %v525_v0  ;;  %v207_v32 = vpop.xlane.xlu1 %206  ;;  %v3089_v11 = vmax.f32 %v3087_v16, %v3088_v26  ;;  %v3090_v0 = vld [vmem:[#allocation39_spill] sm:$0xff]  ;;  %v3097_v26 = vld [vmem:[#allocation44_spill] sm:$0xff] }
  0xab   :  { %852 = vmax.xlane.f32.xlu0 %v3086_v25  ;;  %v500_v51 = vrot.slane %v207_v32, %v2293_v4  ;;  %v183_v53 = vpop.xlane.xlu0 %182  ;;  %v3092_v36 = vmax.f32 %v3090_v0, %v3091_v30  ;;  %v2315_v32 = vsub.s32 %v455_v37, %v2241_v46  ;;  %v3096_v16 = vld [vmem:[#allocation43_spill] sm:$0xff] }
  0xac   :  { %v452_v34 = vrot.slane %v183_v53, %v2293_v4  ;;  %v3093_v53 = vld [vmem:[#allocation41_spill] sm:$0xff] }
  0xad   :  { %v501_v18 = vsel %vm453_vm3, %v500_v51, %v496_v15  ;;  %v3095_v15 = vmax.f32 %v3093_v53, %v3094_v17  ;;  %v3100_v17 = vld [vmem:[#allocation46_spill] sm:$0xff] }
  0xae   :  { %834 = vmax.xlane.f32.xlu1 %v3089_v11  ;;  %v454_v62 = vsel %vm453_vm3, %v452_v34, %v447_v6  ;;  %v246_v29 = vpop.xlane.xlu1 %245  ;;  %v3098_v6 = vmax.f32 %v3096_v16, %v3097_v26 }
  0xaf   :  { %813 = vmax.xlane.f32.xlu0 %v3092_v36  ;;  %v228_v25 = vpop.xlane.xlu0 %227  ;;  %v564_v37 = vrot.slane %v246_v29, %v2252_v23  ;;  %v462_v29 = vadd.s32 4294967256, %v2236_v33 }
  0xb0   :  { %v534_v22 = vrot.slane %v228_v25, %v2268_v10  ;;  %v3099_v25 = vld [vmem:[#allocation45_spill] sm:$0xff] }
  0xb1   :  { %v3101_v53 = vmax.f32 %v3099_v25, %v3100_v17  ;;  %v3109_v17 = vld [vmem:[#allocation64_spill] sm:$0xff] }
  0xb2   :  { %873 = vmax.xlane.f32.xlu1 %v3095_v15  ;;  %v535_v51 = vsel %vm446_vm2, %v534_v22, %v530_v54  ;;  %v186_v34 = vpop.xlane.xlu1 %185  ;;  %v3102_v54 = vld [vmem:[#allocation47_spill] sm:$0xff]  ;;  %v3103_v15 = vld [vmem:[#allocation48_spill] sm:$0xff] }
  0xb3   :  { %855 = vmax.xlane.f32.xlu0 %v3098_v6  ;;  %v459_v11 = vrot.slane %v186_v34, %v2315_v32  ;;  %v249_v0 = vpop.xlane.xlu0 %248  ;;  %v3104_v16 = vmax.f32 %v3102_v54, %v3103_v15 }
  0xb4   :  { %v568_v30 = vrot.slane %v249_v0, %v2255_v5 }
  0xb5   :  { %v461_v36 = vsel %vm460_vm4, %v459_v11, %v454_v62  ;;  %v3105_v11 = vld [vmem:[#allocation58_spill] sm:$0xff] }
  0xb6   :  { %792 = vmax.xlane.f32.xlu1 %v3101_v53  ;;  %v569_v22 = vsel %vm439_vm1, %v568_v30, %v564_v37  ;;  %v231_v26 = vpop.xlane.xlu1 %230  ;;  %v3107_v25 = vmax.f32 %v3105_v11, %v3106_v38  ;;  %v3108_v30 = vld [vmem:[#allocation63_spill] sm:$0xff]  ;;  %v3115_v11 = vld [vmem:[#allocation80_spill] sm:$0xff] }
  0xb7   :  { %876 = vmax.xlane.f32.xlu0 %v3104_v16  ;;  %v539_v6 = vrot.slane %v231_v26, %v2293_v4  ;;  %v210_v34 = vpop.xlane.xlu0 %209  ;;  %v3110_v53 = vmax.f32 %v3108_v30, %v3109_v17  ;;  %v2348_v16 = vsub.s32 %v462_v29, %v2241_v46 }
  0xb8   :  { %v505_v0 = vrot.slane %v210_v34, %v2315_v32  ;;  %v3111_v34 = vld [vmem:[#allocation74_spill] sm:$0xff] }
  0xb9   :  { %v540_v62 = vsel %vm453_vm3, %v539_v6, %v535_v51  ;;  %v3113_v51 = vmax.f32 %v3111_v34, %v3112_v49  ;;  %v3114_v6 = vld [vmem:[#allocation79_spill] sm:$0xff]  ;;  %v3118_v49 = vld [vmem:[#allocation93_spill] sm:$0xff] }
  0xba   :  { %837 = vmax.xlane.f32.xlu1 %v3107_v25  ;;  %v506_v37 = vsel %vm460_vm4, %v505_v0, %v501_v18  ;;  %v270_v54 = vpop.xlane.xlu1 %269  ;;  %v3116_v18 = vmax.f32 %v3114_v6, %v3115_v11 }
  0xbb   :  { %816 = vmax.xlane.f32.xlu0 %v3110_v53  ;;  %v252_v15 = vpop.xlane.xlu0 %251  ;;  %v603_v29 = vrot.slane %v270_v54, %v2252_v23 }
  0xbc   :  { %v573_v26 = vrot.slane %v252_v15, %v2268_v10  ;;  %v3117_v15 = vld [vmem:[#allocation92_spill] sm:$0xff] }
  0xbd   :  { %v3119_v34 = vmax.f32 %v3117_v15, %v3118_v49  ;;  %v3126_v49 = vld [vmem:[#allocation98_spill] sm:$0xff] }
  0xbe   :  { %879 = vmax.xlane.f32.xlu1 %v3113_v51  ;;  %v574_v38 = vsel %vm446_vm2, %v573_v26, %v569_v22  ;;  %v189_v0 = vpop.xlane.xlu1 %188  ;;  %v3120_v26 = vld [vmem:[#allocation94_spill] sm:$0xff]  ;;  %v3121_v51 = vld [vmem:[#allocation95_spill] sm:$0xff] }
  0xbf   :  { %858 = vmax.xlane.f32.xlu0 %v3116_v18  ;;  %v466_v25 = vrot.slane %v189_v0, %v2348_v16  ;;  %v273_v30 = vpop.xlane.xlu0 %272  ;;  %v3122_v6 = vmax.f32 %v3120_v26, %v3121_v51 }
  0xc0   :  { %v607_v17 = vrot.slane %v273_v30, %v2255_v5 }
  0xc1   :  { %v468_v53 = vsel %vm467_vm5, %v466_v25, %v461_v36  ;;  %v3124_v36 = vld [vmem:[#allocation97_spill] sm:$0xff] }
  0xc2   :  { %900 = vmax.xlane.f32.xlu1 %v3119_v34  ;;  %v608_v22 = vsel %vm439_vm1, %v607_v17, %v603_v29  ;;  %v234_v11 = vpop.xlane.xlu1 %233  ;;  %v3125_v25 = vmax.f32 %v3123_v39, %v3124_v36  ;;  %v3127_v29 = vld [vmem:[#allocation99_spill] sm:$0xff]  ;;  %v3129_v39 = vmax.f32 %v2115_v9, %v2117_v1  ;;  %v3134_v9 = vmax.f32 %v2135_v41, %v2137_v40 }
  0xc3   :  { %897 = vmax.xlane.f32.xlu0 %v3122_v6  ;;  %v544_v18 = vrot.slane %v234_v11, %v2315_v32  ;;  %v213_v0 = vpop.xlane.xlu0 %212  ;;  %v3128_v17 = vmax.f32 %v3126_v49, %v3127_v29  ;;  %v469_v6 = vadd.s32 4294967248, %v2236_v33 }
  0xc4   :  { %v510_v54 = vrot.slane %v213_v0, %v2348_v16  ;;  %v3131_v0 = vld [vmem:[#allocation101_spill] sm:$0xff] }
  0xc5   :  { %v545_v30 = vsel %vm460_vm4, %v544_v18, %v540_v62  ;;  %v3130_v18 = vld [vmem:[#allocation100_spill] sm:$0xff]  ;;  %v2392_v29 = vsub.s32 %v469_v6, %v2241_v46 }
  0xc6   :  { %819 = vmax.xlane.f32.xlu1 %v3125_v25  ;;  %v511_v15 = vsel %vm467_vm5, %v510_v54, %v506_v37  ;;  %v276_v34 = vpop.xlane.xlu1 %275  ;;  %v3132_v54 = vmax.f32 %v3130_v18, %v3131_v0 }
  0xc7   :  { %795 = vmax.xlane.f32.xlu0 %v3128_v17  ;;  %v612_v26 = vrot.slane %v276_v34, %v2268_v10  ;;  %v255_v51 = vpop.xlane.xlu0 %254 }
  0xc8   :  { %v578_v11 = vrot.slane %v255_v51, %v2293_v4 }
  0xc9   :  { %v613_v62 = vsel %vm446_vm2, %v612_v26, %v608_v22  ;;  %v3133_v22 = vmax.f32 %v2131_v27, %v2133_v2  ;;  %v3136_v2 = vmax.f32 %v2151_v57, %v2153_v56 }
  0xca   :  { %861 = vmax.xlane.f32.xlu1 %v3129_v39  ;;  %v579_v37 = vsel %vm453_vm3, %v578_v11, %v574_v38  ;;  %v3135_v11 = vmax.f32 %v2147_v50, %v2149_v31  ;;  %v3138_v50 = vmax.f32 %v1833_v59, %v1835_v60  ;;  %v3140_v59 = vmax.f32 %v1847_v12, %v1851_v20 }
  0xcb   :  { %840 = vmax.xlane.f32.xlu0 %v3132_v54  ;;  %v297_v36 = vpop.xlane.xlu1 %296  ;;  %v476_v54 = vadd.s32 4294967240, %v2236_v33 }
  0xcc   :  { %v646_v25 = vrot.slane %v297_v36, %v2255_v5  ;;  %v294_v49 = vpop.xlane.xlu0 %293 }
  0xcd   :  { %v642_v17 = vrot.slane %v294_v49, %v2252_v23  ;;  %v2444_v33 = vsub.s32 %v476_v54, %v2241_v46  ;;  %v3143_v46 = vmax.f32 %v1869_v14, %v1879_v43 }
  0xce   :  { %903 = vmax.xlane.f32.xlu1 %v3133_v22  ;;  %v3145_v22 = vmax.f32 %v1895_v24, %v1897_v19 }
  0xcf   :  { %v647_v1 = vsel %vm439_vm1, %v646_v25, %v642_v17  ;;  %882 = vmax.xlane.f32.xlu0 %v3134_v9  ;;  %v216_v38 = vpop.xlane.xlu1 %215  ;;  %v3141_v25 = vmax.f32 %v1853_v21, %v1855_v28  ;;  %v3147_v9 = vmax.f32 %v1905_v61, %v1907_v7 }
  0xd0   :  { %v515_v34 = vrot.slane %v216_v38, %v2392_v29  ;;  %v192_v26 = vpop.xlane.xlu0 %191 }
  0xd1   :  { %v473_v51 = vrot.slane %v192_v26, %v2392_v29 }
  0xd2   :  { %v516_v6 = vsel %vm474_vm6, %v515_v34, %v511_v15  ;;  %924 = vmax.xlane.f32.xlu1 %v3135_v11  ;;  %v3137_v15 = vmax.f32 %v1819_v52, %v1831_v58  ;;  %v3139_v52 = vmax.f32 %v1843_v3, %v1845_v8  ;;  %v3142_v3 = vmax.f32 %v1865_v45, %v1867_v63  ;;  %v3152_v34 = vld [vmem:[#allocation51_spill] sm:$0xff]  ;;  %v3155_v11 = vld [vmem:[#allocation53_spill] sm:$0xff] }
  0xd3   :  { %v475_v27 = vsel %vm474_vm6, %v473_v51, %v468_v53  ;;  %921 = vmax.xlane.f32.xlu0 %v3136_v2  ;;  %v258_v40 = vpop.xlane.xlu1 %257  ;;  %v3144_v63 = vmax.f32 %v1881_v44, %v1883_v42  ;;  %v3148_v42 = vmax.f32 %v1917_v48, %v1919_v47  ;;  %v3157_v2 = vld [vmem:[#allocation54_spill] sm:$0xff] }
  0xd4   :  { %v583_v41 = vrot.slane %v258_v40, %v2315_v32  ;;  %v237_v39 = vpop.xlane.xlu0 %236  ;;  %v3158_v40 = vld [vmem:[#allocation55_spill] sm:$0xff] }
  0xd5   :  { %v549_v18 = vrot.slane %v237_v39, %v2348_v16 }
  0xd6   :  { %v2415_v0 = vsel %vm460_vm4, %v583_v41, %v579_v37  ;;  %822 = vmax.xlane.f32.xlu1 %v3137_v15  ;;  %v3159_v41 = vmax.f32 %v3157_v2, %v3158_v40  ;;  %v3160_v15 = vld [vmem:[#allocation56_spill] sm:$0xff]  ;;  %v3184_v2 = vld [vmem:[#allocation78_spill] sm:$0xff]  ;;  %v3185_v40 = vld [vmem:[#allocation81_spill] sm:$0xff] }
  0xd7   :  { %v550_v31 = vsel %vm467_vm5, %v549_v18, %v545_v30  ;;  %798 = vmax.xlane.f32.xlu0 %v3138_v50  ;;  %v300_v56 = vpop.xlane.xlu1 %299  ;;  %v3161_v50 = vld [vmem:[#allocation57_spill] sm:$0xff] }
  0xd8   :  { %v651_v57 = vrot.slane %v300_v56, %v2268_v10  ;;  %v279_v53 = vpop.xlane.xlu0 %278  ;;  %v3162_v56 = vmax.f32 %v3160_v15, %v3161_v50  ;;  %v3188_v15 = vld [vmem:[#allocation83_spill] sm:$0xff] }
  0xd9   :  { %v617_v36 = vrot.slane %v279_v53, %v2293_v4 }
  0xda   :  { %v2428_v37 = vsel %vm446_vm2, %v651_v57, %v647_v1  ;;  %864 = vmax.xlane.f32.xlu1 %v3139_v52  ;;  %v3146_v1 = vmax.f32 %v1899_v13, %v1903_v55  ;;  %v3149_v13 = vld [vmem:[#allocation49_spill] sm:$0xff]  ;;  %v3151_v55 = vld [vmem:[#allocation50_spill] sm:$0xff]  ;;  %v3163_v57 = vld [vmem:[#allocation60_spill] sm:$0xff] }
  0xdb   :  { %v2434_v58 = vsel %vm453_vm3, %v617_v36, %v613_v62  ;;  %843 = vmax.xlane.f32.xlu0 %v3140_v59  ;;  %v2439_v60 = vpop.xlane.xlu1 %320  ;;  %v3150_v24 = vmax.f32 %v1921_v35, %v3149_v13  ;;  %v3153_v26 = vmax.f32 %v3151_v55, %v3152_v34  ;;  %v3178_v55 = vld [vmem:[#allocation72_spill] sm:$0xff]  ;;  %v3179_v34 = vld [vmem:[#allocation73_spill] sm:$0xff] }
  0xdc   :  { %v2441_v30 = vpop.xlane.xlu0 %317 }
  0xde   :  { %906 = vmax.xlane.f32.xlu1 %v3141_v25  ;;  %v3166_v25 = vld [vmem:[#allocation62_spill] sm:$0xff] }
  0xdf   :  { %885 = vmax.xlane.f32.xlu0 %v3142_v3  ;;  %v219_v8 = vpop.xlane.xlu1 %218  ;;  %v3167_v3 = vld [vmem:[#allocation65_spill] sm:$0xff] }
  0xe0   :  { %v520_v12 = vrot.slane %v219_v8, %v2444_v33  ;;  %v195_v20 = vpop.xlane.xlu0 %194  ;;  %v3168_v8 = vmax.f32 %v3166_v25, %v3167_v3 }
  0xe1   :  { %v480_v62 = vrot.slane %v195_v20, %v2444_v33  ;;  %v3170_v20 = vld [vmem:[#allocation67_spill] sm:$0xff] }
  0xe2   :  { %v521_v49 = vsel %vm481_vm7, %v520_v12, %v516_v6  ;;  %945 = vmax.xlane.f32.xlu1 %v3143_v46  ;;  %v3154_v6 = vld [vmem:[#allocation52_spill] sm:$0xff]  ;;  %v3169_v12 = vld [vmem:[#allocation66_spill] sm:$0xff] }
  0xe3   :  { %v482_v21 = vsel %vm481_vm7, %v480_v62, %v475_v27  ;;  %927 = vmax.xlane.f32.xlu0 %v3144_v63  ;;  %v261_v28 = vpop.xlane.xlu1 %260  ;;  %v3156_v27 = vmax.f32 %v3154_v6, %v3155_v11  ;;  %v3171_v62 = vmax.f32 %v3169_v12, %v3170_v20  ;;  %v3193_v12 = vld [vmem:[#allocation86_spill] sm:$0xff]  ;;  %v3194_v20 = vld [vmem:[#allocation87_spill] sm:$0xff] }
  0xe4   :  { %v757_v45 = vsel %vm756_vm8, %v521_v49, %v482_v21  ;;  %v240_v17 = vpop.xlane.xlu0 %239  ;;  %v588_v36 = vrot.slane %v261_v28, %v2348_v16 }
  0xe5   :  { %v554_v19 = vrot.slane %v240_v17, %v2392_v29  ;;  %v3172_v17 = vld [vmem:[#allocation68_spill] sm:$0xff] }
  0xe6   :  { %846 = vmax.xlane.f32.xlu1 %v3145_v22  ;;  %v589_v46 = vsel %vm467_vm5, %v588_v36, %v2415_v0  ;;  %v3173_v22 = vld [vmem:[#allocation69_spill] sm:$0xff]  ;;  %v3190_v36 = vld [vmem:[#allocation84_spill] sm:$0xff] }
  0xe7   :  { %948 = vmax.xlane.f32.xlu0 %v3146_v1  ;;  %v2469_v43 = vpop.xlane.xlu1 %302  ;;  %v555_v48 = vsel %vm474_vm6, %v554_v19, %v550_v31  ;;  %v3164_v31 = vld [vmem:[#allocation61_spill] sm:$0xff]  ;;  %v3174_v1 = vmax.f32 %v3172_v17, %v3173_v22  ;;  %v3176_v19 = vld [vmem:[#allocation71_spill] sm:$0xff]  ;;  %v3196_v17 = vld [vmem:[#allocation90_spill] sm:$0xff] }
  0xe8   :  { %v282_v14 = vpop.xlane.xlu0 %281  ;;  %v3165_v53 = vmax.f32 %v3163_v57, %v3164_v31  ;;  %v656_v3 = vrot.slane %v2469_v43, %v2293_v4  ;;  %v3197_v22 = vld [vmem:[#allocation91_spill] sm:$0xff] }
  0xe9   :  { %v622_v6 = vrot.slane %v282_v14, %v2315_v32  ;;  %v3198_v43 = vmax.f32 %v3196_v17, %v3197_v22  ;;  %v1365_v17 = vld [vmem:[%s2826_s1 + $0x18] sm:$0xff] }
  0xea   :  { %888 = vmax.xlane.f32.xlu1 %v3147_v9 }
  0xeb   :  { %867 = vmax.xlane.f32.xlu0 %v3148_v42  ;;  %v2477_v44 = vpop.xlane.xlu1 %341  ;;  %v3175_v42 = vld [vmem:[#allocation70_spill] sm:$0xff]  ;;  %v623_v57 = vsel %vm460_vm4, %v622_v6, %v2434_v58  ;;  %v3195_v58 = vmax.f32 %v3193_v12, %v3194_v20  ;;  %v681_v6 = vrot.slane %v2441_v30, %v2252_v23 }
  0xec   :  { %v2479_v38 = vpop.xlane.xlu0 %323  ;;  %v3177_v13 = vmax.f32 %v3175_v42, %v3176_v19  ;;  %v3199_v42 = vld [vmem:[#allocation88_spill] sm:$0xff]  ;;  %v3200_v19 = vld [vmem:[#allocation89_spill] sm:$0xff] }
  0xee   :  { %930 = vmax.xlane.f32.xlu1 %v3150_v24 }
  0xef   :  { %909 = vmax.xlane.f32.xlu0 %v3153_v26  ;;  %v243_v7 = vpop.xlane.xlu1 %242  ;;  %v3180_v26 = vmax.f32 %v3178_v55, %v3179_v34 }
  0xf0   :  { %v559_v61 = vrot.slane %v243_v7, %v2444_v33  ;;  %v2489_v47 = vpop.xlane.xlu0 %344  ;;  %v3181_v7 = vld [vmem:[#allocation76_spill] sm:$0xff] }
  0xf2   :  { %v560_v51 = vsel %vm481_vm7, %v559_v61, %v555_v48  ;;  %870 = vmax.xlane.f32.xlu1 %v3156_v27  ;;  %v3182_v61 = vld [vmem:[#allocation77_spill] sm:$0xff] }
  0xf3   :  { %v759_v35 = vsel %vm758_vm9, %v560_v51, %v757_v45  ;;  %951 = vmax.xlane.f32.xlu0 %v3159_v41  ;;  %v285_v39 = vpop.xlane.xlu1 %284  ;;  %v3183_v48 = vmax.f32 %v3181_v7, %v3182_v61  ;;  %v3186_v41 = vmax.f32 %v3184_v2, %v3185_v40  ;;  %v724_v2 = vrot.slane %v2489_v47, %v2255_v5 }
  0xf4   :  { %v264_v18 = vpop.xlane.xlu0 %263  ;;  %v627_v27 = vrot.slane %v285_v39, %v2348_v16  ;;  %v720_v47 = vrot.slane %v2477_v44, %v2252_v23 }
  0xf5   :  { %v593_v59 = vrot.slane %v264_v18, %v2392_v29  ;;  %v3187_v18 = vld [vmem:[#allocation82_spill] sm:$0xff] }
  0xf6   :  { %912 = vmax.xlane.f32.xlu1 %v3162_v56  ;;  %v3189_v50 = vmax.f32 %v3187_v18, %v3188_v15  ;;  %v628_v14 = vsel %vm467_vm5, %v627_v27, %v623_v57  ;;  %v690_v27 = vrot.slane %v2479_v38, %v2268_v10  ;;  %v725_v57 = vsel %vm439_vm1, %v724_v2, %v720_v47 }
  0xf7   :  { %891 = vmax.xlane.f32.xlu0 %v3165_v53  ;;  %v2506_v54 = vpop.xlane.xlu1 %326  ;;  %v594_v28 = vsel %vm474_vm6, %v593_v59, %v589_v46  ;;  %v3191_v59 = vld [vmem:[#allocation85_spill] sm:$0xff] }
  0xf8   :  { %v306_v52 = vpop.xlane.xlu0 %305  ;;  %v3192_v25 = vmax.f32 %v3190_v36, %v3191_v59  ;;  %v695_v40 = vrot.slane %v2506_v54, %v2293_v4 }
  0xfa   :  { %954 = vmax.xlane.f32.xlu1 %v3168_v8 }
  0xfb   :  { %933 = vmax.xlane.f32.xlu0 %v3171_v62  ;;  %v267_v49 = vpop.xlane.xlu1 %266 }
  0xfc   :  { %v598_v21 = vrot.slane %v267_v49, %v2444_v33  ;;  %v2519_v63 = vpop.xlane.xlu0 %347  ;;  %v661_v49 = vrot.slane %v306_v52, %v2315_v32 }
  0xfd   :  { %v729_v30 = vrot.slane %v2519_v63, %v2268_v10 }
  0xfe   :  { %v599_v45 = vsel %vm481_vm7, %v598_v21, %v594_v28  ;;  %915 = vmax.xlane.f32.xlu1 %v3174_v1  ;;  %v657_v1 = vsel %vm453_vm3, %v656_v3, %v2428_v37 }
  0xff   :  { %v761_v9 = vsel %vm760_vm10, %v599_v45, %v759_v35  ;;  %894 = vmax.xlane.f32.xlu0 %v3177_v13  ;;  %v309_v0 = vpop.xlane.xlu1 %308  ;;  %v3201_v13 = vmax.f32 %v3199_v42, %v3200_v19  ;;  %v662_v52 = vsel %vm460_vm4, %v661_v49, %v657_v1  ;;  %v1364_v42 = vld [vmem:[%s2826_s1 + $0x10] sm:$0xff] }
 0x100   :  { %v288_v24 = vpop.xlane.xlu0 %287  ;;  %v666_v28 = vrot.slane %v309_v0, %v2348_v16 }
 0x101   :  { %v632_v35 = vrot.slane %v288_v24, %v2392_v29 }
 0x102   :  { %957 = vmax.xlane.f32.xlu1 %v3180_v26  ;;  %v667_v55 = vsel %vm467_vm5, %v666_v28, %v662_v52 }
 0x103   :  { %936 = vmax.xlane.f32.xlu0 %v3183_v48  ;;  %v2536_v51 = vpop.xlane.xlu1 %350  ;;  %v633_v53 = vsel %vm474_vm6, %v632_v35, %v628_v14  ;;  %v685_v48 = vrot.slane %v2439_v60, %v2255_v5  ;;  %v1680_v35 = vmov -inf   ;;  %v1369_v60 = vld [vmem:[%s2826_s1 + $0x38] sm:$0xff] }
 0x104   :  { %v2539_v11 = vpop.xlane.xlu0 %329  ;;  %42 = vst.msk [vmem:[#allocation2 + $0x8] sm:$0xff] %vm39_vm0, %v1680_v35  ;;  %1598 = vmatprep.subr.mxu0 %v1369_v60  ;;  %v734_v63 = vrot.slane %v2536_v51, %v2293_v4  ;;  %v730_v51 = vsel %vm446_vm2, %v729_v30, %v725_v57 }
 0x105   :  { %v700_v38 = vrot.slane %v2539_v11, %v2315_v32  ;;  %v686_v15 = vsel %vm439_vm1, %v685_v48, %v681_v6  ;;  %1599 = vmatpush3.msra.mxu0 %v1369_v60 }
 0x106   :  { %939 = vmax.xlane.f32.xlu1 %v3186_v41 }
 0x107   :  { %918 = vmax.xlane.f32.xlu0 %v3189_v50  ;;  %v312_v56 = vpop.xlane.xlu1 %311  ;;  %v1368_v50 = vld [vmem:[%s2826_s1 + $0x30] sm:$0xff] }
 0x108   :  { %v291_v31 = vpop.xlane.xlu0 %290  ;;  %v671_v45 = vrot.slane %v312_v56, %v2392_v29  ;;  %v691_v56 = vsel %vm446_vm2, %v690_v27, %v686_v15  ;;  %1600 = vmatprep.subr.mxu0 %v1368_v50 }
 0x109   :  { %v637_v39 = vrot.slane %v291_v31, %v2444_v33  ;;  %v696_v31 = vsel %vm453_vm3, %v695_v40, %v691_v56  ;;  %1601 = vmatpush3.msra.mxu0 %v1368_v50 }
 0x10a   :  { %942 = vmax.xlane.f32.xlu1 %v3192_v25  ;;  %v672_v34 = vsel %vm474_vm6, %v671_v45, %v667_v55  ;;  %v701_v36 = vsel %vm460_vm4, %v700_v38, %v696_v31 }
 0x10b   :  { %v638_v8 = vsel %vm481_vm7, %v637_v39, %v633_v53  ;;  %960 = vmax.xlane.f32.xlu0 %v3195_v58  ;;  %v2563_v62 = vpop.xlane.xlu1 %353  ;;  %v1367_v53 = vld [vmem:[%s2826_s1 + $0x28] sm:$0xff]  ;;  %v1366_v58 = vld [vmem:[%s2826_s1 + $0x20] sm:$0xff] }
 0x10c   :  { %v763_v46 = vsel %vm762_vm11, %v638_v8, %v761_v9  ;;  %v333_v21 = vpop.xlane.xlu0 %332  ;;  %v739_v44 = vrot.slane %v2563_v62, %v2315_v32  ;;  %1602 = vmatprep.subr.mxu0 %v1367_v53  ;;  %v735_v62 = vsel %vm453_vm3, %v734_v63, %v730_v51 }
 0x10d   :  { %v705_v54 = vrot.slane %v333_v21, %v2348_v16  ;;  %1603 = vmatpush3.msra.mxu0 %v1367_v53 }
 0x10e   :  { %966 = vmax.xlane.f32.xlu1 %v3198_v43  ;;  %1604 = vmatprep.subr.mxu0 %v1366_v58 }
 0x10f   :  { %963 = vmax.xlane.f32.xlu0 %v3201_v13  ;;  %v336_v24 = vpop.xlane.xlu1 %335  ;;  %v706_v3 = vsel %vm467_vm5, %v705_v54, %v701_v36  ;;  %1605 = vmatpush3.msra.mxu0 %v1366_v58 }
 0x110   :  { %v315_v9 = vpop.xlane.xlu0 %314  ;;  %v710_v11 = vrot.slane %v336_v24, %v2392_v29  ;;  %1606 = vmatprep.subr.mxu0 %v1365_v17  ;;  %v171_v24 = vld [vmem:[#allocation2] sm:$0xff] }
 0x111   :  { %v676_v0 = vrot.slane %v315_v9, %v2444_v33  ;;  %1607 = vmatpush3.msra.mxu0 %v1365_v17  ;;  %v1363_v9 = vld [vmem:[%s2826_s1 + $0x8] sm:$0xff] }
 0x112   :  { %v711_v49 = vsel %vm474_vm6, %v710_v11, %v706_v3  ;;  %1608 = vmatprep.subr.mxu0 %v1364_v42 }
 0x113   :  { %v677_v26 = vsel %vm481_vm7, %v676_v0, %v672_v34  ;;  %v339_v7 = vpop.xlane.xlu1 %338  ;;  %1609 = vmatpush3.msra.mxu0 %v1364_v42 }
 0x114   :  { %v2583_v37 = vsel %vm764_vm12, %v677_v26, %v763_v46  ;;  %v357_v61 = vpop.xlane.xlu0 %356  ;;  %v715_v14 = vrot.slane %v339_v7, %v2444_v33  ;;  %v740_v46 = vsel %vm460_vm4, %v739_v44, %v735_v62  ;;  %1610 = vmatprep.subr.mxu0 %v1363_v9 }
 0x115   :  { %v744_v59 = vrot.slane %v357_v61, %v2348_v16  ;;  %v1362_v61 = vld [vmem:[%s2826_s1] sm:$0xff]  ;;  %1611 = vmatpush3.msra.mxu0 %v1363_v9 }
 0x116   :  { %v716_v21 = vsel %vm481_vm7, %v715_v14, %v711_v49  ;;  %1612 = vmatprep.subr.mxu0 %v1362_v61 }
 0x117   :  { %v778_v41 = vpop.xlane.xlu1 %777  ;;  %v745_v22 = vsel %vm467_vm5, %v744_v59, %v740_v46  ;;  %v767_v55 = vsel %vm766_vm13, %v716_v21, %v2583_v37  ;;  %1613 = vmatpush3.msra.mxu0 %v1362_v61 }
 0x118   :  { %v360_v18 = vpop.xlane.xlu0 %359  ;;  %v1035_v8 = vrot.slane %v778_v41, %v2252_v23 }
 0x119   :  { %v749_v12 = vrot.slane %v360_v18, %v2392_v29 }
 0x11b   :  { %v802_v39 = vpop.xlane.xlu1 %801  ;;  %v750_v19 = vsel %vm474_vm6, %v749_v12, %v745_v22 }
 0x11c   :  { %v781_v25 = vpop.xlane.xlu0 %780  ;;  %v1074_v13 = vrot.slane %v802_v39, %v2252_v23 }
 0x11d   :  { %v1039_v20 = vrot.slane %v781_v25, %v2255_v5 }
 0x11f   :  { %v1040_v28 = vsel %vm439_vm1, %v1039_v20, %v1035_v8  ;;  %v363_v45 = vpop.xlane.xlu1 %362 }
 0x120   :  { %v754_v43 = vrot.slane %v363_v45, %v2444_v33  ;;  %v805_v1 = vpop.xlane.xlu0 %804 }
 0x121   :  { %v1078_v52 = vrot.slane %v805_v1, %v2255_v5 }
 0x122   :  { %v755_v0 = vsel %vm481_vm7, %v754_v43, %v750_v19 }
 0x123   :  { %v769_v34 = vsel %vm768_vm14, %v755_v0, %v767_v55  ;;  %v1079_v26 = vsel %vm439_vm1, %v1078_v52, %v1074_v13  ;;  %v808_v7 = vpop.xlane.xlu1 %807 }
 0x124   :  { %v771_v48 = vadd.f32 %v769_v34, %v171_v24  ;;  %v1083_v6 = vrot.slane %v808_v7, %v2268_v10  ;;  %v784_v27 = vpop.xlane.xlu0 %783 }
 0x125   :  { %v1044_v37 = vrot.slane %v784_v27, %v2268_v10 }
 0x126   :  { %773 = vst.msk [vmem:[#allocation2] sm:$0xff] %vm39_vm0, %v771_v48  ;;  %v1084_v35 = vsel %vm446_vm2, %v1083_v6, %v1079_v26 }
 0x127   :  { %v1045_v2 = vsel %vm446_vm2, %v1044_v37, %v1040_v28  ;;  %v829_v40 = vpop.xlane.xlu1 %828 }
 0x128   :  { %v1117_v41 = vrot.slane %v829_v40, %v2255_v5  ;;  %v826_v60 = vpop.xlane.xlu0 %825 }
 0x129   :  { %v1113_v30 = vrot.slane %v826_v60, %v2252_v23 }
 0x12b   :  { %v1118_v38 = vsel %vm439_vm1, %v1117_v41, %v1113_v30  ;;  %v811_v18 = vpop.xlane.xlu1 %810 }
 0x12c   :  { %v1088_v15 = vrot.slane %v811_v18, %v2293_v4  ;;  %v787_v47 = vpop.xlane.xlu0 %786 }
 0x12d   :  { %v1357_v54 = vld [vmem:[#allocation2] sm:$0xff]  ;;  %v1049_v50 = vrot.slane %v787_v47, %v2293_v4 }
 0x12e   :  { %v1358_v56 = vmul.f32 0.00390625, %v1357_v54  ;;  %v1089_v63 = vsel %vm453_vm3, %v1088_v15, %v1084_v35 }
 0x12f   :  { %v1050_v11 = vsel %vm453_vm3, %v1049_v50, %v1045_v2  ;;  %v850_v57 = vpop.xlane.xlu1 %849 }
 0x130   :  { %1359 = vst.msk [vmem:[#allocation2] sm:$0xff] %vm39_vm0, %v1358_v56  ;;  %v832_v31 = vpop.xlane.xlu0 %831  ;;  %v1152_v36 = vrot.slane %v850_v57, %v2252_v23 }
 0x131   :  { %v1122_v44 = vrot.slane %v832_v31, %v2268_v10 }
 0x133   :  { %v1123_v14 = vsel %vm446_vm2, %v1122_v44, %v1118_v38  ;;  %v790_v39 = vpop.xlane.xlu1 %789 }
 0x134   :  { %v1054_v53 = vrot.slane %v790_v39, %v2315_v32  ;;  %v853_v51 = vpop.xlane.xlu0 %852 }
 0x135   :  { %v1156_v59 = vrot.slane %v853_v51, %v2255_v5 }
 0x136   :  { %v1055_v25 = vsel %vm460_vm4, %v1054_v53, %v1050_v11 }
 0x137   :  { %v1157_v3 = vsel %vm439_vm1, %v1156_v59, %v1152_v36  ;;  %v835_v8 = vpop.xlane.xlu1 %834  ;;  %v1360_v12 = vld [vmem:[#allocation2] sm:$0xff] }
 0x138   :  { %v1127_v20 = vrot.slane %v835_v8, %v2293_v4  ;;  %v814_v58 = vpop.xlane.xlu0 %813  ;;  %1614 = vmatprep.mubr.msk.f32.mxu0 %vm39_vm0, %v1360_v12 }
 0x139   :  { %v1093_v62 = vrot.slane %v814_v58, %v2315_v32 }
 0x13a   :  { %v1128_v49 = vsel %vm453_vm3, %v1127_v20, %v1123_v14 }
 0x13b   :  { %v1094_v46 = vsel %vm460_vm4, %v1093_v62, %v1089_v63  ;;  %v874_v21 = vpop.xlane.xlu1 %873 }
 0x13c   :  { %v856_v28 = vpop.xlane.xlu0 %855  ;;  %v1191_v42 = vrot.slane %v874_v21, %v2252_v23 }
 0x13d   :  { %v1161_v45 = vrot.slane %v856_v28, %v2268_v10 }
 0x13f   :  { %v1162_v17 = vsel %vm446_vm2, %v1161_v45, %v1157_v3  ;;  %v793_v22 = vpop.xlane.xlu1 %792 }
 0x140   :  { %v1059_v43 = vrot.slane %v793_v22, %v2348_v16  ;;  %v877_v1 = vpop.xlane.xlu0 %876 }
 0x141   :  { %v1195_v19 = vrot.slane %v877_v1, %v2255_v5 }
 0x142   :  { %v1060_v13 = vsel %vm467_vm5, %v1059_v43, %v1055_v25 }
 0x143   :  { %v1196_v24 = vsel %vm439_vm1, %v1195_v19, %v1191_v42  ;;  %v838_v52 = vpop.xlane.xlu1 %837 }
 0x144   :  { %v1132_v9 = vrot.slane %v838_v52, %v2315_v32  ;;  %v817_v55 = vpop.xlane.xlu0 %816 }
 0x145   :  { %v1098_v0 = vrot.slane %v817_v55, %v2348_v16 }
 0x146   :  { %v1133_v34 = vsel %vm460_vm4, %v1132_v9, %v1128_v49 }
 0x147   :  { %v1099_v26 = vsel %vm467_vm5, %v1098_v0, %v1094_v46  ;;  %v880_v7 = vpop.xlane.xlu1 %879 }
 0x148   :  { %v1200_v61 = vrot.slane %v880_v7, %v2268_v10  ;;  %v859_v48 = vpop.xlane.xlu0 %858 }
 0x149   :  { %v1166_v6 = vrot.slane %v859_v48, %v2293_v4 }
 0x14a   :  { %v2698_v27 = vsel %vm446_vm2, %v1200_v61, %v1196_v24 }
 0x14b   :  { %v1167_v37 = vsel %vm453_vm3, %v1166_v6, %v1162_v17  ;;  %v901_v35 = vpop.xlane.xlu1 %900 }
 0x14c   :  { %v1234_v2 = vrot.slane %v901_v35, %v2255_v5  ;;  %v898_v40 = vpop.xlane.xlu0 %897 }
 0x14d   :  { %v1230_v41 = vrot.slane %v898_v40, %v2252_v23 }
 0x14f   :  { %v2704_v60 = vsel %vm439_vm1, %v1234_v2, %v1230_v41  ;;  %v820_v30 = vpop.xlane.xlu1 %819 }
 0x150   :  { %v1103_v38 = vrot.slane %v820_v30, %v2392_v29  ;;  %v796_v18 = vpop.xlane.xlu0 %795 }
 0x151   :  { %v1064_v15 = vrot.slane %v796_v18, %v2392_v29 }
 0x152   :  { %v1104_v47 = vsel %vm474_vm6, %v1103_v38, %v1099_v26 }
 0x153   :  { %v1065_v54 = vsel %vm474_vm6, %v1064_v15, %v1060_v13  ;;  %v862_v50 = vpop.xlane.xlu1 %861 }
 0x154   :  { %v841_v56 = vpop.xlane.xlu0 %840  ;;  %v1171_v19 = vrot.slane %v862_v50, %v2315_v32 }
 0x155   :  { %v1137_v58 = vrot.slane %v841_v56, %v2348_v16 }
 0x156   :  { %v1172_v55 = vsel %vm460_vm4, %v1171_v19, %v1167_v37 }
 0x157   :  { %v2710_v63 = vpop.xlane.xlu1 %903  ;;  %v1138_v21 = vsel %vm467_vm5, %v1137_v58, %v1133_v34 }
 0x158   :  { %v883_v11 = vpop.xlane.xlu0 %882 }
 0x159   :  { %v1205_v40 = vrot.slane %v883_v11, %v2293_v4  ;;  %v1239_v11 = vrot.slane %v2710_v63, %v2268_v10 }
 0x15b   :  { %v2712_v57 = vpop.xlane.xlu1 %924  ;;  %v1206_v15 = vsel %vm453_vm3, %v1205_v40, %v2698_v27 }
 0x15c   :  { %v2714_v31 = vpop.xlane.xlu0 %921  ;;  %v1273_v63 = vrot.slane %v2712_v57, %v2255_v5 }
 0x15f   :  { %v823_v44 = vpop.xlane.xlu1 %822 }
 0x160   :  { %v1108_v14 = vrot.slane %v823_v44, %v2444_v33  ;;  %v799_v39 = vpop.xlane.xlu0 %798 }
 0x161   :  { %v1069_v53 = vrot.slane %v799_v39, %v2444_v33 }
 0x162   :  { %v1109_v51 = vsel %vm481_vm7, %v1108_v14, %v1104_v47 }
 0x163   :  { %v1070_v36 = vsel %vm481_vm7, %v1069_v53, %v1065_v54  ;;  %v865_v59 = vpop.xlane.xlu1 %864 }
 0x164   :  { %v1344_v25 = vsel %vm756_vm8, %v1109_v51, %v1070_v36  ;;  %v844_v3 = vpop.xlane.xlu0 %843  ;;  %v1176_v24 = vrot.slane %v865_v59, %v2348_v16 }
 0x165   :  { %v1142_v49 = vrot.slane %v844_v3, %v2392_v29  ;;  %v1240_v3 = vsel %vm446_vm2, %v1239_v11, %v2704_v60 }
 0x166   :  { %v1177_v34 = vsel %vm467_vm5, %v1176_v24, %v1172_v55 }
 0x167   :  { %v907_v8 = vpop.xlane.xlu1 %906  ;;  %v1143_v17 = vsel %vm474_vm6, %v1142_v49, %v1138_v21 }
 0x168   :  { %v886_v12 = vpop.xlane.xlu0 %885  ;;  %v1244_v39 = vrot.slane %v907_v8, %v2293_v4 }
 0x169   :  { %v1210_v30 = vrot.slane %v886_v12, %v2315_v32  ;;  %v1269_v12 = vrot.slane %v2714_v31, %v2252_v23 }
 0x16a   :  { %v1245_v58 = vsel %vm453_vm3, %v1244_v39, %v1240_v3 }
 0x16b   :  { %v2721_v20 = vpop.xlane.xlu1 %945  ;;  %v1211_v54 = vsel %vm460_vm4, %v1210_v30, %v1206_v15  ;;  %v1274_v31 = vsel %vm439_vm1, %v1273_v63, %v1269_v12 }
 0x16c   :  { %v2724_v62 = vpop.xlane.xlu0 %927 }
 0x16f   :  { %v847_v46 = vpop.xlane.xlu1 %846 }
 0x170   :  { %v1147_v28 = vrot.slane %v847_v46, %v2444_v33  ;;  %v2729_v45 = vpop.xlane.xlu0 %948  ;;  %v1278_v46 = vrot.slane %v2724_v62, %v2268_v10  ;;  %v1308_v62 = vrot.slane %v2721_v20, %v2252_v23 }
 0x172   :  { %v1148_v22 = vsel %vm481_vm7, %v1147_v28, %v1143_v17 }
 0x173   :  { %v1345_v43 = vsel %vm758_vm9, %v1148_v22, %v1344_v25  ;;  %v889_v1 = vpop.xlane.xlu1 %888  ;;  %v1312_v22 = vrot.slane %v2729_v45, %v2255_v5 }
 0x174   :  { %v868_v42 = vpop.xlane.xlu0 %867  ;;  %v1215_v38 = vrot.slane %v889_v1, %v2348_v16 }
 0x175   :  { %v1181_v9 = vrot.slane %v868_v42, %v2392_v29  ;;  %v1313_v20 = vsel %vm439_vm1, %v1312_v22, %v1308_v62  ;;  %vm1468_vm1 = vcmask 31744  }
 0x176   :  { %v1216_v56 = vsel %vm467_vm5, %v1215_v38, %v1211_v54  ;;  %v1577_v54 = vld [vmem:[%s2827_s2] ss:$0 sm:$0xff]  ;;  %s1681_s2 = smov [#allocation6]  }
 0x177   :  { %v2735_v13 = vpop.xlane.xlu1 %930  ;;  %v1182_v61 = vsel %vm474_vm6, %v1181_v9, %v1177_v34 }
 0x178   :  { %v910_v52 = vpop.xlane.xlu0 %909  ;;  %v1283_v60 = vrot.slane %v2735_v13, %v2293_v4 }
 0x179   :  { %v1249_v27 = vrot.slane %v910_v52, %v2315_v32  ;;  %v1279_v52 = vsel %vm446_vm2, %v1278_v46, %v1274_v31 }
 0x17b   :  { %v871_v0 = vpop.xlane.xlu1 %870  ;;  %v1250_v21 = vsel %vm460_vm4, %v1249_v27, %v1245_v58 }
 0x17c   :  { %v1186_v26 = vrot.slane %v871_v0, %v2444_v33  ;;  %v952_v7 = vpop.xlane.xlu0 %951  ;;  %v1284_v0 = vsel %vm453_vm3, %v1283_v60, %v1279_v52 }
 0x17d   :  { %v1317_v42 = vrot.slane %v952_v7, %v2268_v10 }
 0x17e   :  { %v1187_v48 = vsel %vm481_vm7, %v1186_v26, %v1182_v61 }
 0x17f   :  { %v1346_v6 = vsel %vm760_vm10, %v1187_v48, %v1345_v43  ;;  %v913_v35 = vpop.xlane.xlu1 %912  ;;  %v1318_v7 = vsel %vm446_vm2, %v1317_v42, %v1313_v20 }
 0x180   :  { %v892_v2 = vpop.xlane.xlu0 %891  ;;  %v1254_v25 = vrot.slane %v913_v35, %v2348_v16 }
 0x181   :  { %v1220_v18 = vrot.slane %v892_v2, %v2392_v29 }
 0x182   :  { %v1255_v17 = vsel %vm467_vm5, %v1254_v25, %v1250_v21 }
 0x183   :  { %v955_v41 = vpop.xlane.xlu1 %954  ;;  %v1221_v14 = vsel %vm474_vm6, %v1220_v18, %v1216_v56 }
 0x184   :  { %v934_v37 = vpop.xlane.xlu0 %933  ;;  %v1322_v9 = vrot.slane %v955_v41, %v2293_v4 }
 0x185   :  { %v1288_v43 = vrot.slane %v934_v37, %v2315_v32  ;;  %v775_v37 = vld [vmem:[#allocation2 + $0x8] sm:$0xff] }
 0x186   :  { %v1323_v48 = vsel %vm453_vm3, %v1322_v9, %v1318_v7 }
 0x187   :  { %v916_v47 = vpop.xlane.xlu1 %915  ;;  %v1289_v34 = vsel %vm460_vm4, %v1288_v43, %v1284_v0 }
 0x188   :  { %v895_v50 = vpop.xlane.xlu0 %894  ;;  %v1259_v8 = vrot.slane %v916_v47, %v2392_v29 }
 0x189   :  { %v1225_v44 = vrot.slane %v895_v50, %v2444_v33 }
 0x18a   :  { %v1260_v1 = vsel %vm474_vm6, %v1259_v8, %v1255_v17 }
 0x18b   :  { %v1226_v53 = vsel %vm481_vm7, %v1225_v44, %v1221_v14  ;;  %v958_v51 = vpop.xlane.xlu1 %957 }
 0x18c   :  { %v1347_v36 = vsel %vm762_vm11, %v1226_v53, %v1346_v6  ;;  %v937_v59 = vpop.xlane.xlu0 %936  ;;  %v1327_v23 = vrot.slane %v958_v51, %v2315_v32  ;;  %v1580_v51 = vld [vmem:[%s2829_s4] ss:$0 sm:$0xff] }
 0x18d   :  { %v1293_v19 = vrot.slane %v937_v59, %v2348_v16 }
 0x18e   :  { %v1328_v2 = vsel %vm460_vm4, %v1327_v23, %v1323_v48 }
 0x18f   :  { %v940_v49 = vpop.xlane.xlu1 %939  ;;  %v1294_v4 = vsel %vm467_vm5, %v1293_v19, %v1289_v34 }
 0x190   :  { %v919_v28 = vpop.xlane.xlu0 %918  ;;  %v1298_v5 = vrot.slane %v940_v49, %v2392_v29 }
 0x191   :  { %v1264_v57 = vrot.slane %v919_v28, %v2444_v33 }
 0x192   :  { %v1299_v6 = vsel %vm474_vm6, %v1298_v5, %v1294_v4 }
 0x193   :  { %v1265_v13 = vsel %vm481_vm7, %v1264_v57, %v1260_v1  ;;  %v943_v24 = vpop.xlane.xlu1 %942 }
 0x194   :  { %v1348_v45 = vsel %vm764_vm12, %v1265_v13, %v1347_v36  ;;  %v961_v55 = vpop.xlane.xlu0 %960  ;;  %v1303_v10 = vrot.slane %v943_v24, %v2444_v33 }
 0x195   :  { %v1332_v26 = vrot.slane %v961_v55, %v2348_v16 }
 0x196   :  { %v1304_v40 = vsel %vm481_vm7, %v1303_v10, %v1299_v6 }
 0x197   :  { %v967_v61 = vpop.xlane.xlu1 %966  ;;  %v1333_v16 = vsel %vm467_vm5, %v1332_v26, %v1328_v2  ;;  %v1349_v38 = vsel %vm766_vm13, %v1304_v40, %v1348_v45 }
 0x198   :  { %v964_v35 = vpop.xlane.xlu0 %963  ;;  %v1342_v32 = vrot.slane %v967_v61, %v2444_v33 }
 0x199   :  { %v1337_v41 = vrot.slane %v964_v35, %v2392_v29  ;;  %v1460_v29 = vld [vmem:[%s2828_s3] sm:$0xf]  ;;  %s1568_s3 = sshll.u32 %s1681_s2, 4  ;;  %s1569_s3 = int_to_ptr.vmem [resolvable:$true] %s1568_s3 }
 0x19a   :  { %1617 = vmatprep.subr.msk.mxu1 %vm1475_vm15, %v1460_v29  ;;  %s1652_s20 = scalar_lea.vmem %s1569_s3, 128  ;;  %p1657_p6 = scmp.lt.s32.totalorder %s1569_s3, %s1569_s3 }
 0x19b   :  { %v1338_v30 = vsel %vm474_vm6, %v1337_v41, %v1333_v16  ;;  %1618 = vmatpush3.msk.msra.mxu1 %vm1475_vm15, %v1460_v29  ;;  %p1653_p5 = scmp.ne.s32.totalorder %s1569_s3, %s1652_s20  ;;  %p1658_p7 = scmp.lt.s32.totalorder %s1652_s20, %s1652_s20 }
 0x19c   :  { %v1343_v18 = vsel %vm481_vm7, %v1342_v32, %v1338_v30 }
 0x19d   :  { %v1350_v15 = vsel %vm768_vm14, %v1343_v18, %v1349_v38  ;;  %p1659_p8 = por %p1658_p7, %p1657_p6 }
 0x19e   :  { %v1352_v47 = vmax.f32 %v775_v37, %v1350_v15 }
 0x19f   :  { %p1660_p9 = pnand %p1659_p8, %p1653_p5 }
 0x1a0   :  { %1353 = vst.msk [vmem:[#allocation2 + $0x8] sm:$0xff] %vm39_vm0, %v1352_v47 }
 0x1a7   :  { %v1361_v33 = vld [vmem:[#allocation2 + $0x8] sm:$0xff] }
 0x1a8   :  { %1615 = vmatmul.mubr.msk.f32.vlgmr.msra.gmra.mxu0 %vm39_vm0, %v1361_v33 }
 0x268   :  { %v1616_v50 = vpop.f32.mrf.mxu0 }
 0x269   :  { %v1455_v56 = vadd.f32 %v1616_v50, %v1577_v54 }
 0x26a   :  { %v1449_v44 = vpop.f32.mrf.mxu0 }
 0x26b   :  { %v1450_v11 = vadd.f32 %v1577_v54, %v1449_v44  ;;  %v1459_v39 = vmax.f32 %v1455_v56, 0.0 }
 0x26d   :  { %v1458_v14 = vmax.f32 %v1450_v11, 0.0 }
 0x26f   :  { %1619 = vmatprep.mubr.msk.f32.mxu1 %vm1468_vm1, %v1458_v14 }
 0x270   :  { %1620 = vmatmul.mubr.msk.f32.vlgmr.msra.gmra.mxu1 %vm1468_vm1, %v1459_v39 }
 0x330   :  { %v1621_v53 = vpop.f32.mrf.mxu1 }
 0x331   :  { %v1551_v36 = vadd.f32 %v1621_v53, %v1580_v51 }
 0x332   :  { %v1545_v27 = vpop.f32.mrf.mxu1 }
 0x333   :  { %v1546_v59 = vadd.f32 %v1580_v51, %v1545_v27 }
 0x335   :  { %v1554_v25 = vadd.f32 %v1551_v36, %v1546_v59 }
 0x337   :  { %v1584_v3 = vmul.f32 -1.442695, %v1554_v25 }
 0x339   :  { %1628 = vpow2.f32 %v1584_v3 }
 0x346   :  { %v1629_v63 = vpop.eup %1628 }
 0x347   :  { %v1558_v12 = vadd.f32 1.0, %v1629_v63 }
 0x349   :  { %1630 = vrcp.f32 %v1558_v12 }
 0x356   :  { %v1631_v8 = vpop.eup %1630 }
 0x357   :  { %1561 = vst.msk [vmem:[#allocation6] sm:$0xff] %vm39_vm0, %v1631_v8 }
 0x358   :  { %1663 = shalt.err (!%p1660_p9)
}
 0x359   :  { %1571 = dma.vmem_to_hbm [thread:$0]  %s1569_s3, 128, %s2830_s5, [#allocation5]  }
 0x35a   :  { %1674 = dma.done.wait [#allocation5], 128  }
 0x35b   :  { %1675 = vsyncadd [#allocation5], 4294967168 }
 0x35c   :  { %1575 = vsyncpa [#allocation4], 1 }
 0x35d   :  { %1576 = vsyncpa [#allocation5], 1 }

</bundles_post_ra>
